<compile_context>
chip_gen: v7x
topology: tpu7x:2x2x1
jax: 0.10.0
libtpu: 0.0.40
codegen_flags: <defaults>
</compile_context>

<pallas_src>
import functools

import jax
import jax.numpy as jnp
from jax.experimental import pallas as pl


# ----------------------------------------------------------------------------
# Fully fused Pallas kernel: the whole Critic forward in one invocation.
# refs = (x, action,
#         m_pre, b_pre, m_asc_x, m_asc_a, b_asc,
#         [m_conv_l, b_conv_l] * n_conv_layers,
#         w_fc, b_fc, w_out, b_out,
#         o)
# ----------------------------------------------------------------------------
def _critic_kernel(n_conv_layers, *refs):
    o_ref = refs[-1]
    x_ref, act_ref = refs[0], refs[1]
    wb = refs[2:-1]

    def mm(a, w_ref):
        return jnp.dot(a, w_ref[...], preferred_element_type=jnp.float32)

    x = x_ref[...]        # (N, Cin*H*W)  NCHW-flattened state maps
    act = act_ref[...]    # (N, n_agents)

    # pre-conv (unrolled to a dense matmul; 1e7 scale folded into weights) + ReLU
    h = jnp.maximum(mm(x, wb[0]) + wb[1][...], 0.0)
    # `ascend` Linear over cat([pre, action.expand_as(pre)], dim=1) + ReLU.
    # The concat + spatial broadcast are folded into two matmuls.
    h = jnp.maximum(mm(h, wb[2]) + mm(act, wb[3]) + wb[4][...], 0.0)
    # conv stack (each conv unrolled to a dense matmul over NCHW features) + ReLU
    idx = 5
    for _ in range(n_conv_layers):
        h = jnp.maximum(mm(h, wb[idx]) + wb[idx + 1][...], 0.0)
        idx += 2
    # flatten is implicit (features already in NCHW order); FC + ReLU, then head
    h = jnp.maximum(mm(h, wb[idx]) + wb[idx + 1][...], 0.0)
    o_ref[...] = mm(h, wb[idx + 2]) + wb[idx + 3][...]


def critic_forward(folded_weights, channel, action, *, n_conv_layers, n_agents):
    """channel: (N, Cin, H, W), action: (N, n_agents, 1, 1) -> (N, 1)."""
    n = channel.shape[0]
    x = channel.reshape(n, -1).astype(jnp.float32)        # NCHW flatten (contiguous)
    act = action.reshape(n, n_agents).astype(jnp.float32)
    kern = functools.partial(_critic_kernel, n_conv_layers)
    # No grid: single invocation, every operand is a whole-array VMEM block,
    # all intermediates stay on-chip; only the (N, 1) result goes back to HBM.
    # (For large batches one could add a batch grid axis marked "parallel" to
    #  use both v7x TensorCores; at N=2 it is not worth it.)
    return pl.pallas_call(
        kern,
        out_shape=jax.ShapeDtypeStruct((n, 1), jnp.float32),
    )(x, act, *folded_weights)


# ----------------------------------------------------------------------------
# One-time weight folding (outside the kernel / per-step path)
# ----------------------------------------------------------------------------
def _conv_out_hw(h, w, k, stride, pad, dil):
    ho = (h + 2 * pad - dil * (k - 1) - 1) // stride + 1
    wo = (w + 2 * pad - dil * (k - 1) - 1) // stride + 1
    return ho, wo


def _conv_as_matmul(w, b, hw, stride, padding, dilation):
    """Unroll a PyTorch-semantics Conv2d into (M, b_row, (ho, wo)) such that
    conv(x).flatten_NCHW == x.flatten_NCHW @ M + b_row  (per sample)."""
    hp = jax.lax.Precision.HIGHEST
    cout, cin, k, _ = w.shape
    h, wd = hw
    ho, wo = _conv_out_hw(h, wd, k, stride, padding, dilation)
    w = w.astype(jnp.float32)
    ys, xs = jnp.arange(h), jnp.arange(wd)
    oys, oxs = jnp.arange(ho), jnp.arange(wo)
    m6 = jnp.zeros((cin, h, wd, cout, ho, wo), jnp.float32)
    for ky in range(k):
        sy = (ys[:, None] == (oys[None, :] * stride - padding + ky * dilation))
        for kx in range(k):
            sx = (xs[:, None] == (oxs[None, :] * stride - padding + kx * dilation))
            m6 = m6 + jnp.einsum('oc,yp,xq->cyxopq', w[:, :, ky, kx],
                                 sy.astype(jnp.float32), sx.astype(jnp.float32),
                                 precision=hp)
    m = m6.reshape(cin * h * wd, cout * ho * wo)
    b_row = jnp.repeat(b.astype(jnp.float32), ho * wo).reshape(1, cout * ho * wo)
    return m, b_row, (ho, wo)


def fold_critic_params(params, args, input_hw):
    """Pre-fold every layer into (rows, features) matmul form.  Done once."""
    a = args.n_agents
    # pre-conv; fold the 1e7 forward-pass input scale into the weight matrix.
    m_pre, b_pre, hw = _conv_as_matmul(params['pre_w'], params['pre_b'], input_hw,
                                       args.critic_pre_stride,
                                       args.critic_pre_padding, 1)
    m_pre = m_pre * jnp.float32(1e7)
    h, w = hw
    assert w == args.state_dim2, 'ascend width must equal pre-conv output width'
    c_aug = 2 * a
    # `ascend` (Linear on the last axis of an NCHW tensor) == block-diagonal
    # kron(I_{C*H}, W) on NCHW-flattened features.  Split its rows into the
    # pre-conv half and the action half; the action's spatial broadcast is
    # folded by summing the corresponding rows (so the kernel only needs the
    # raw (N, n_agents) action).
    m_asc = jnp.kron(jnp.eye(c_aug * h, dtype=jnp.float32),
                     params['ascend_w'].astype(jnp.float32))
    b_asc = jnp.tile(params['ascend_b'].astype(jnp.float32), c_aug * h).reshape(1, -1)
    n_pre = a * h * w
    m_asc_x = m_asc[:n_pre, :]
    m_asc_a = m_asc[n_pre:, :].reshape(a, h * w, c_aug * h * w).sum(axis=1)

    flat = [m_pre, b_pre, m_asc_x, m_asc_a, b_asc]
    for l in range(args.layer_number):
        m, b, hw = _conv_as_matmul(params[f'conv{l}_w'], params[f'conv{l}_b'], hw,
                                   args.kernal_stride[l], args.padding_size[l],
                                   args.dilation[l])
        flat += [m, b]
    assert params['fc_w'].shape[0] == args.kernal_number[-1] * hw[0] * hw[1]
    flat += [params['fc_w'].astype(jnp.float32),
             params['fc_b'].reshape(1, -1).astype(jnp.float32),
             params['out_w'].astype(jnp.float32),
             params['out_b'].reshape(1, -1).astype(jnp.float32)]
    return flat


# ----------------------------------------------------------------------------
# Module definition (args, raw params) and a plain-JAX reference for checking
# ----------------------------------------------------------------------------
class Args:
    critic_pre_stride = 1
    critic_pre_kernel_size = 1
    critic_pre_padding = 0
    kernal_number = [8, 4]
    kernal_size = [3, 3]
    kernal_stride = [1, 1]
    padding_size = [1, 0]
    dilation = [1, 1]
    layer_number = 2
    total_state_matrix_number = 4   # input channels of `channel`
    n_agents = 3
    state_dim2 = 8                  # == W of the state maps; `ascend` acts on it
    fc_dim = 32


def init_params(key, args, input_hw):
    keys = jax.random.split(key, 16)

    def init(k, shape, s=0.1):
        return s * jax.random.normal(k, shape, jnp.float32)

    p = {}
    cin = args.total_state_matrix_number
    a = args.n_agents
    kp = args.critic_pre_kernel_size
    p["pre_w"] = init(keys[0], (a, cin, kp, kp))
    p["pre_b"] = init(keys[1], (a,))
    # ascend Linear stored as (in, out): y = x @ W + b  (math-equivalent to torch)
    p["ascend_w"] = init(keys[2], (args.state_dim2, args.state_dim2))
    p["ascend_b"] = init(keys[3], (args.state_dim2,))

    h, w = input_hw
    h, w = _conv_out_hw(h, w, kp, args.critic_pre_stride, args.critic_pre_padding, 1)
    c = 2 * a
    ki = 4
    for l in range(args.layer_number):
        co, k_ = args.kernal_number[l], args.kernal_size[l]
        p[f"conv{l}_w"] = init(keys[ki], (co, c, k_, k_)); ki += 1
        p[f"conv{l}_b"] = init(keys[ki], (co,)); ki += 1
        h, w = _conv_out_hw(h, w, k_, args.kernal_stride[l],
                            args.padding_size[l], args.dilation[l])
        c = co
    conv_output_dim = c * h * w                       # == Flatten() width (NCHW)
    p["fc_w"] = init(keys[ki], (conv_output_dim, args.fc_dim)); ki += 1
    p["fc_b"] = init(keys[ki], (args.fc_dim,)); ki += 1
    p["out_w"] = init(keys[ki], (args.fc_dim, 1)); ki += 1
    p["out_b"] = init(keys[ki], (1,))
    return p


def reference_forward(params, args, channel, action):
    """Plain-JAX mirror of the PyTorch Critic.forward (verification only)."""
    hp = jax.lax.Precision.HIGHEST

    def conv(x, w, b, stride, padding, dilation):
        y = jax.lax.conv_general_dilated(
            x, w, (stride, stride), [(padding, padding), (padding, padding)],
            rhs_dilation=(dilation, dilation),
            dimension_numbers=('NCHW', 'OIHW', 'NCHW'), precision=hp)
        return y + b.reshape(1, -1, 1, 1)

    pre = jax.nn.relu(conv(1e7 * channel, params['pre_w'], params['pre_b'],
                           args.critic_pre_stride, args.critic_pre_padding, 1))
    aug = jnp.concatenate([pre, jnp.broadcast_to(action, pre.shape)], axis=1)
    x = jax.nn.relu(jnp.einsum('nchw,wv->nchv', aug, params['ascend_w'],
                               precision=hp) + params['ascend_b'])
    for l in range(args.layer_number):
        x = jax.nn.relu(conv(x, params[f'conv{l}_w'], params[f'conv{l}_b'],
                             args.kernal_stride[l], args.padding_size[l],
                             args.dilation[l]))
    flat = x.reshape(x.shape[0], -1)
    fc = jax.nn.relu(jnp.dot(flat, params['fc_w'], precision=hp) + params['fc_b'])
    return jnp.dot(fc, params['out_w'], precision=hp) + params['out_b']


if __name__ == "__main__":
    args = Args()
    key = jax.random.PRNGKey(0)
    k_params, k_chan, k_act = jax.random.split(key, 3)

    H = W = args.state_dim2  # 8
    N = 2
    params = init_params(k_params, args, input_hw=(H, W))

    # channel kept tiny so the 1e7 scale in forward() stays numerically tame
    channel = 1e-6 * jax.random.normal(
        k_chan, (N, args.total_state_matrix_number, H, W), jnp.float32)
    action = jax.random.normal(k_act, (N, args.n_agents, 1, 1), jnp.float32)

    # One-time weight fold (not on the per-step path).
    folded = [jax.device_put(w) for w in fold_critic_params(params, args, (H, W))]

    fwd = jax.jit(functools.partial(critic_forward,
                                    n_conv_layers=args.layer_number,
                                    n_agents=args.n_agents))
    v = jax.block_until_ready(fwd(folded, channel, action))
    assert v.shape == (N, 1) and v.dtype == jnp.float32

    # Verify against the plain-JAX reference (loose tolerance to accommodate
    # MXU f32 matmul pass differences; structural bugs would be O(1) relative).
    ref = jax.block_until_ready(reference_forward(params, args, channel, action))
    err = float(jnp.max(jnp.abs(v - ref)))
    tol = 5e-2 * float(jnp.max(jnp.abs(ref))) + 5e-3
    assert err <= tol, f"kernel/reference mismatch: max abs err {err} > {tol}"

    print("KERNEL_OK")
</pallas_src>

<mosaic_0001>
module attributes {stable_mosaic.version = 11 : i64} {
  func.func @_critic_kernel(%arg0: memref<2x256xf32, #tpu.memory_space<vmem>>, %arg1: memref<2x3xf32, #tpu.memory_space<vmem>>, %arg2: memref<256x192xf32, #tpu.memory_space<vmem>>, %arg3: memref<1x192xf32, #tpu.memory_space<vmem>>, %arg4: memref<192x384xf32, #tpu.memory_space<vmem>>, %arg5: memref<3x384xf32, #tpu.memory_space<vmem>>, %arg6: memref<1x384xf32, #tpu.memory_space<vmem>>, %arg7: memref<384x512xf32, #tpu.memory_space<vmem>>, %arg8: memref<1x512xf32, #tpu.memory_space<vmem>>, %arg9: memref<512x144xf32, #tpu.memory_space<vmem>>, %arg10: memref<1x144xf32, #tpu.memory_space<vmem>>, %arg11: memref<144x32xf32, #tpu.memory_space<vmem>>, %arg12: memref<1x32xf32, #tpu.memory_space<vmem>>, %arg13: memref<32x1xf32, #tpu.memory_space<vmem>>, %arg14: memref<1x1xf32, #tpu.memory_space<vmem>>, %arg15: memref<2x1xf32, #tpu.memory_space<vmem>>) attributes {dimension_semantics = [], scalar_prefetch = 0 : i64, scratch_operands = 0 : i64, tpu.core_type = #tpu.core_type<tc>} {
    %c0 = arith.constant 0 : index
    %c0_0 = arith.constant 0 : index
    %0 = vector.load %arg0[%c0, %c0_0] : memref<2x256xf32, #tpu.memory_space<vmem>>, vector<2x256xf32>
    %c0_1 = arith.constant 0 : index
    %c0_2 = arith.constant 0 : index
    %1 = vector.load %arg1[%c0_1, %c0_2] : memref<2x3xf32, #tpu.memory_space<vmem>>, vector<2x3xf32>
    %c0_3 = arith.constant 0 : index
    %c0_4 = arith.constant 0 : index
    %2 = vector.load %arg2[%c0_3, %c0_4] : memref<256x192xf32, #tpu.memory_space<vmem>>, vector<256x192xf32>
    %cst = arith.constant dense<0.000000e+00> : vector<2x192xf32>
    %3 = tpu.matmul %0, %2, %cst {dimension_numbers = #tpu.dot_dimension_numbers<[1], [0], [0], [1], [0, 0, 1, 1], [], []>} : vector<2x256xf32>, vector<256x192xf32>, vector<2x192xf32> -> vector<2x192xf32>
    %c0_5 = arith.constant 0 : index
    %c0_6 = arith.constant 0 : index
    %4 = vector.load %arg3[%c0_5, %c0_6] : memref<1x192xf32, #tpu.memory_space<vmem>>, vector<1x192xf32>
    %5 = vector.broadcast %4 : vector<1x192xf32> to vector<2x192xf32>
    %6 = arith.addf %3, %5 : vector<2x192xf32>
    %cst_7 = arith.constant 0.000000e+00 : f32
    %7 = vector.broadcast %cst_7 : f32 to vector<2x192xf32>
    %8 = arith.maximumf %6, %7 : vector<2x192xf32>
    %c0_8 = arith.constant 0 : index
    %c0_9 = arith.constant 0 : index
    %9 = vector.load %arg4[%c0_8, %c0_9] : memref<192x384xf32, #tpu.memory_space<vmem>>, vector<192x384xf32>
    %cst_10 = arith.constant dense<0.000000e+00> : vector<2x384xf32>
    %10 = tpu.matmul %8, %9, %cst_10 {dimension_numbers = #tpu.dot_dimension_numbers<[1], [0], [0], [1], [0, 0, 1, 1], [], []>} : vector<2x192xf32>, vector<192x384xf32>, vector<2x384xf32> -> vector<2x384xf32>
    %c0_11 = arith.constant 0 : index
    %c0_12 = arith.constant 0 : index
    %11 = vector.load %arg5[%c0_11, %c0_12] : memref<3x384xf32, #tpu.memory_space<vmem>>, vector<3x384xf32>
    %cst_13 = arith.constant dense<0.000000e+00> : vector<2x384xf32>
    %12 = tpu.matmul %1, %11, %cst_13 {dimension_numbers = #tpu.dot_dimension_numbers<[1], [0], [0], [1], [0, 0, 1, 1], [], []>} : vector<2x3xf32>, vector<3x384xf32>, vector<2x384xf32> -> vector<2x384xf32>
    %13 = arith.addf %10, %12 : vector<2x384xf32>
    %c0_14 = arith.constant 0 : index
    %c0_15 = arith.constant 0 : index
    %14 = vector.load %arg6[%c0_14, %c0_15] : memref<1x384xf32, #tpu.memory_space<vmem>>, vector<1x384xf32>
    %15 = vector.broadcast %14 : vector<1x384xf32> to vector<2x384xf32>
    %16 = arith.addf %13, %15 : vector<2x384xf32>
    %cst_16 = arith.constant 0.000000e+00 : f32
    %17 = vector.broadcast %cst_16 : f32 to vector<2x384xf32>
    %18 = arith.maximumf %16, %17 : vector<2x384xf32>
    %c0_17 = arith.constant 0 : index
    %c0_18 = arith.constant 0 : index
    %19 = vector.load %arg7[%c0_17, %c0_18] : memref<384x512xf32, #tpu.memory_space<vmem>>, vector<384x512xf32>
    %cst_19 = arith.constant dense<0.000000e+00> : vector<2x512xf32>
    %20 = tpu.matmul %18, %19, %cst_19 {dimension_numbers = #tpu.dot_dimension_numbers<[1], [0], [0], [1], [0, 0, 1, 1], [], []>} : vector<2x384xf32>, vector<384x512xf32>, vector<2x512xf32> -> vector<2x512xf32>
    %c0_20 = arith.constant 0 : index
    %c0_21 = arith.constant 0 : index
    %21 = vector.load %arg8[%c0_20, %c0_21] : memref<1x512xf32, #tpu.memory_space<vmem>>, vector<1x512xf32>
    %22 = vector.broadcast %21 : vector<1x512xf32> to vector<2x512xf32>
    %23 = arith.addf %20, %22 : vector<2x512xf32>
    %cst_22 = arith.constant 0.000000e+00 : f32
    %24 = vector.broadcast %cst_22 : f32 to vector<2x512xf32>
    %25 = arith.maximumf %23, %24 : vector<2x512xf32>
    %c0_23 = arith.constant 0 : index
    %c0_24 = arith.constant 0 : index
    %26 = vector.load %arg9[%c0_23, %c0_24] : memref<512x144xf32, #tpu.memory_space<vmem>>, vector<512x144xf32>
    %cst_25 = arith.constant dense<0.000000e+00> : vector<2x144xf32>
    %27 = tpu.matmul %25, %26, %cst_25 {dimension_numbers = #tpu.dot_dimension_numbers<[1], [0], [0], [1], [0, 0, 1, 1], [], []>} : vector<2x512xf32>, vector<512x144xf32>, vector<2x144xf32> -> vector<2x144xf32>
    %c0_26 = arith.constant 0 : index
    %c0_27 = arith.constant 0 : index
    %28 = vector.load %arg10[%c0_26, %c0_27] : memref<1x144xf32, #tpu.memory_space<vmem>>, vector<1x144xf32>
    %29 = vector.broadcast %28 : vector<1x144xf32> to vector<2x144xf32>
    %30 = arith.addf %27, %29 : vector<2x144xf32>
    %cst_28 = arith.constant 0.000000e+00 : f32
    %31 = vector.broadcast %cst_28 : f32 to vector<2x144xf32>
    %32 = arith.maximumf %30, %31 : vector<2x144xf32>
    %c0_29 = arith.constant 0 : index
    %c0_30 = arith.constant 0 : index
    %33 = vector.load %arg11[%c0_29, %c0_30] : memref<144x32xf32, #tpu.memory_space<vmem>>, vector<144x32xf32>
    %cst_31 = arith.constant dense<0.000000e+00> : vector<2x32xf32>
    %34 = tpu.matmul %32, %33, %cst_31 {dimension_numbers = #tpu.dot_dimension_numbers<[1], [0], [0], [1], [0, 0, 1, 1], [], []>} : vector<2x144xf32>, vector<144x32xf32>, vector<2x32xf32> -> vector<2x32xf32>
    %c0_32 = arith.constant 0 : index
    %c0_33 = arith.constant 0 : index
    %35 = vector.load %arg12[%c0_32, %c0_33] : memref<1x32xf32, #tpu.memory_space<vmem>>, vector<1x32xf32>
    %36 = vector.broadcast %35 : vector<1x32xf32> to vector<2x32xf32>
    %37 = arith.addf %34, %36 : vector<2x32xf32>
    %cst_34 = arith.constant 0.000000e+00 : f32
    %38 = vector.broadcast %cst_34 : f32 to vector<2x32xf32>
    %39 = arith.maximumf %37, %38 : vector<2x32xf32>
    %c0_35 = arith.constant 0 : index
    %c0_36 = arith.constant 0 : index
    %40 = vector.load %arg13[%c0_35, %c0_36] : memref<32x1xf32, #tpu.memory_space<vmem>>, vector<32x1xf32>
    %cst_37 = arith.constant dense<0.000000e+00> : vector<2x1xf32>
    %41 = tpu.matmul %39, %40, %cst_37 {dimension_numbers = #tpu.dot_dimension_numbers<[1], [0], [0], [1], [0, 0, 1, 1], [], []>} : vector<2x32xf32>, vector<32x1xf32>, vector<2x1xf32> -> vector<2x1xf32>
    %c0_38 = arith.constant 0 : index
    %c0_39 = arith.constant 0 : index
    %42 = vector.load %arg14[%c0_38, %c0_39] : memref<1x1xf32, #tpu.memory_space<vmem>>, vector<1x1xf32>
    %43 = vector.broadcast %42 : vector<1x1xf32> to vector<2x1xf32>
    %44 = arith.addf %41, %43 : vector<2x1xf32>
    %c0_40 = arith.constant 0 : index
    %c0_41 = arith.constant 0 : index
    %45 = vector.load %arg15[%c0_40, %c0_41] : memref<2x1xf32, #tpu.memory_space<vmem>>, vector<2x1xf32>
    tpu.vector_store %arg15[%c0_40, %c0_41], %44 {strides = array<i32>} : memref<2x1xf32, #tpu.memory_space<vmem>>, vector<2x1xf32>,
    return
  }
}

</mosaic_0001>

<bundles_post_ra>
// kernel: critic_forward.1
= control target key start
LH: loop header
LB: loop body
LE: loop exit
PB: predicated region body
PF: predicated region fallthrough
CT: control target
= control target key end

     0   :  { %v2142_v3 = vmov 0.0   ;;  %vm295_vm0 = vcmask 1042432   ;;  %vm291_vm1 = vcmask 23552   ;;  %vm2143_vm2 = vmmov 0   ;;  %s3781_s2 = inlined_call_operand.vmem [shape: f32[256,192], index: 2, kind: input, shape index: {}]   ;;  %s3782_s0 = inlined_call_operand.vmem [shape: f32[2,256], index: 0, kind: input, shape index: {}]   ;;  %s3783_s5 = inlined_call_operand.vmem [shape: f32[3,384], index: 5, kind: input, shape index: {}]   ;;  %s3784_s4 = inlined_call_operand.vmem [shape: f32[192,384], index: 4, kind: input, shape index: {}]   ;;  %s3785_s1 = inlined_call_operand.vmem [shape: f32[2,3], index: 1, kind: input, shape index: {}]   ;;  %s3786_s7 = inlined_call_operand.vmem [shape: f32[384,512], index: 7, kind: input, shape index: {}]   ;;  %s3787_s3 = inlined_call_operand.vmem [shape: f32[1,192], index: 3, kind: input, shape index: {}]   ;;  %s3788_s6 = inlined_call_operand.vmem [shape: f32[1,384], index: 6, kind: input, shape index: {}]   ;;  %s3789_s9 = inlined_call_operand.vmem [shape: f32[512,144], index: 9, kind: input, shape index: {}]   ;;  %s3790_s11 = inlined_call_operand.vmem [shape: f32[144,32], index: 11, kind: input, shape index: {}]   ;;  %s3791_s8 = inlined_call_operand.vmem [shape: f32[1,512], index: 8, kind: input, shape index: {}]   ;;  %s3792_s13 = inlined_call_operand.vmem [shape: f32[32,1], index: 13, kind: input, shape index: {}]   ;;  %s3793_s10 = inlined_call_operand.vmem [shape: f32[1,144], index: 10, kind: input, shape index: {}]   ;;  %s3794_s14 = inlined_call_operand.<no memory space> [shape: f32[1,1], index: 14, kind: input, shape index: {}]   ;;  %s3795_s12 = inlined_call_operand.vmem [shape: f32[1,32], index: 12, kind: input, shape index: {}]   ;;  %s3796_s15 = inlined_call_operand.vmem [shape: f32[2,1], index: 15, kind: output, shape index: {}]  }
   0x1   :  { %v55_v0 = vld [vmem:[%s3781_s2 + $0x8] sm:$0xff]  ;;  %v57_v1 = vld [vmem:[%s3781_s2 + $0x18] sm:$0xff]  ;;  %v54_v2 = vld [vmem:[%s3781_s2] sm:$0xff]  ;;  %366 = vmatprep.mubr.f32.mxu1 %v2142_v3  ;;  %vm443_vm3 = vcmask 523264   ;;  %vm1422_vm4 = vcmask 130048   ;;  %vm1508_vm5 = vcmask 261120  }
   0x2   :  { %v1623_v4 = vpack.c.bf16 %v57_v1, %v55_v0  ;;  %v56_v5 = vld [vmem:[%s3781_s2 + $0x10] sm:$0xff]  ;;  %v59_v6 = vld [vmem:[%s3781_s2 + $0x28] sm:$0xff]  ;;  %v61_v7 = vld [vmem:[%s3781_s2 + $0x38] sm:$0xff]  ;;  %vm1582_vm6 = vcmask 1024  }
   0x3   :  { %v1625_v8 = vpack.c.bf16 %v56_v5, %v54_v2  ;;  %v1627_v9 = vpack.c.bf16 %v61_v7, %v59_v6  ;;  %v58_v10 = vld [vmem:[%s3781_s2 + $0x20] sm:$0xff]  ;;  %v60_v11 = vld [vmem:[%s3781_s2 + $0x30] sm:$0xff]  ;;  %v63_v12 = vld [vmem:[%s3781_s2 + $0x48] sm:$0xff] }
   0x4   :  { %1624 = vmatprep.subr.bf16.mxu0 %v1623_v4  ;;  %v65_v13 = vld [vmem:[%s3781_s2 + $0x58] sm:$0xff]  ;;  %v1629_v14 = vpack.c.bf16 %v60_v11, %v58_v10  ;;  %v62_v16 = vld [vmem:[%s3781_s2 + $0x40] sm:$0xff]  ;;  %v64_v17 = vld [vmem:[%s3781_s2 + $0x50] sm:$0xff] }
   0x5   :  { %1626 = vmatpush1.bf16.msra.mxu0 %v1625_v8  ;;  %v1631_v15 = vpack.c.bf16 %v65_v13, %v63_v12  ;;  %v67_v18 = vld [vmem:[%s3781_s2 + $0x68] sm:$0xff]  ;;  %v69_v19 = vld [vmem:[%s3781_s2 + $0x78] sm:$0xff]  ;;  %v1633_v20 = vpack.c.bf16 %v64_v17, %v62_v16  ;;  %v66_v22 = vld [vmem:[%s3781_s2 + $0x60] sm:$0xff] }
   0x6   :  { %1628 = vmatprep.subr.bf16.mxu0 %v1627_v9  ;;  %v1635_v21 = vpack.c.bf16 %v69_v19, %v67_v18  ;;  %v68_v23 = vld [vmem:[%s3781_s2 + $0x70] sm:$0xff]  ;;  %v71_v24 = vld [vmem:[%s3781_s2 + $0x88] sm:$0xff]  ;;  %v73_v25 = vld [vmem:[%s3781_s2 + $0x98] sm:$0xff] }
   0x7   :  { %v1637_v26 = vpack.c.bf16 %v68_v23, %v66_v22  ;;  %v1639_v27 = vpack.c.bf16 %v73_v25, %v71_v24  ;;  %v70_v28 = vld [vmem:[%s3781_s2 + $0x80] sm:$0xff]  ;;  %v72_v29 = vld [vmem:[%s3781_s2 + $0x90] sm:$0xff]  ;;  %v75_v30 = vld [vmem:[%s3781_s2 + $0xa8] sm:$0xff] }
   0x8   :  { %v77_v31 = vld [vmem:[%s3781_s2 + $0xb8] sm:$0xff]  ;;  %v1641_v32 = vpack.c.bf16 %v72_v29, %v70_v28  ;;  %v74_v34 = vld [vmem:[%s3781_s2 + $0xa0] sm:$0xff]  ;;  %v76_v35 = vld [vmem:[%s3781_s2 + $0xb0] sm:$0xff] }
   0x9   :  { %1630 = vmatpush1.bf16.msra.mxu0 %v1629_v14  ;;  %v1643_v33 = vpack.c.bf16 %v77_v31, %v75_v30  ;;  %v79_v36 = vld [vmem:[%s3781_s2 + $0xc8] sm:$0xff]  ;;  %v81_v37 = vld [vmem:[%s3781_s2 + $0xd8] sm:$0xff]  ;;  %v1645_v38 = vpack.c.bf16 %v76_v35, %v74_v34  ;;  %v78_v40 = vld [vmem:[%s3781_s2 + $0xc0] sm:$0xff] }
   0xa   :  { %1632 = vmatprep.subr.bf16.mxu0 %v1631_v15  ;;  %v1647_v39 = vpack.c.bf16 %v81_v37, %v79_v36  ;;  %v80_v41 = vld [vmem:[%s3781_s2 + $0xd0] sm:$0xff]  ;;  %v2313_v42 = vld.sshfl [vmem:[%s3782_s0] sm:$0x33 pattern:$0x76325410]  ;;  %v83_v43 = vld [vmem:[%s3781_s2 + $0xe8] sm:$0xff] }
   0xb   :  { %v85_v44 = vld [vmem:[%s3781_s2 + $0xf8] sm:$0xff]  ;;  %v138_v45 = vcombine.high %v2313_v42, %v2313_v42  ;;  %v286_v46 = vld [vmem:[%s3783_s5] sm:$0x77]  ;;  %v215_v49 = vld [vmem:[%s3784_s4 + $0x8] sm:$0xff]  ;;  %v1649_v51 = vpack.c.bf16 %v80_v41, %v78_v40 }
   0xc   :  { %v82_v47 = vld [vmem:[%s3781_s2 + $0xe0] sm:$0xff]  ;;  %v290_v48 = vcombine.high %v286_v46, %v286_v46  ;;  %v84_v52 = vld [vmem:[%s3781_s2 + $0xf0] sm:$0xff]  ;;  %v87_v53 = vld [vmem:[%s3781_s2 + $0x108] sm:$0xff]  ;;  %v1651_v55 = vpack.c.bf16 %v85_v44, %v83_v43 }
   0xd   :  { %1634 = vmatpush1.bf16.msra.mxu0 %v1633_v20  ;;  %v218_v50 = vld [vmem:[%s3784_s4 + $0x20] sm:$0xff]  ;;  %205 = vmatprep.mubr.f32.mxu0 %v138_v45  ;;  %v287_v56 = vld [vmem:[%s3783_s5 + $0x8] sm:$0x7]  ;;  %v217_v58 = vld [vmem:[%s3784_s4 + $0x18] sm:$0xff]  ;;  %v1653_v63 = vpack.c.bf16 %v84_v52, %v82_v47 }
   0xe   :  { %1636 = vmatprep.subr.bf16.mxu0 %v1635_v21  ;;  %v53_v54 = vld [vmem:[%s3785_s1] sm:$0x3]  ;;  %1589 = vmatprep.subr.msk.mxu1 %vm295_vm0, %v290_v48  ;;  %v89_v59 = vld [vmem:[%s3781_s2 + $0x118] sm:$0xff]  ;;  %v1687_v60 = vpack.c.bf16 %v218_v50, %v215_v49  ;;  %v224_v62 = vld [vmem:[%s3784_s4 + $0x50] sm:$0xff] }
   0xf   :  { %v214_v57 = vld [vmem:[%s3784_s4] sm:$0xff]  ;;  %1590 = vmatpush1.msk.msra.mxu1 %vm295_vm0, %v286_v46  ;;  %v221_v61 = vld [vmem:[%s3784_s4 + $0x38] sm:$0xff]  ;;  %v88_v1 = vld [vmem:[%s3781_s2 + $0x110] sm:$0xff]  ;;  %v1655_v4 = vpack.c.bf16 %v89_v59, %v87_v53 }
  0x10   :  { %1591 = vmatmul.mubr.msk.f32.vlgmr.msra.gmra.mrb[0].mxu1 %vm291_vm1, %v53_v54  ;;  %1607 = vmatprep.subr.mxu1 %v2142_v3  ;;  %v86_v0 = vld [vmem:[%s3781_s2 + $0x100] sm:$0xff]  ;;  %v1689_v2 = vpack.c.bf16 %v217_v58, %v214_v57  ;;  %v91_v5 = vld [vmem:[%s3781_s2 + $0x128] sm:$0xff]  ;;  %v1691_v6 = vpack.c.bf16 %v224_v62, %v221_v61  ;;  %v220_v7 = vld [vmem:[%s3784_s4 + $0x30] sm:$0xff] }
  0x11   :  { %1638 = vmatpush1.bf16.msra.mxu0 %v1637_v26  ;;  %1608 = vmatpush3.msk.msra.mxu1 %vm295_vm0, %v287_v56  ;;  %v223_v8 = vld [vmem:[%s3784_s4 + $0x48] sm:$0xff]  ;;  %v93_v9 = vld [vmem:[%s3781_s2 + $0x138] sm:$0xff]  ;;  %v230_v11 = vld [vmem:[%s3784_s4 + $0x80] sm:$0xff]  ;;  %v1657_v12 = vpack.c.bf16 %v88_v1, %v86_v0 }
  0x12   :  { %1640 = vmatprep.subr.bf16.mxu0 %v1639_v27  ;;  %1609 = vmatprep.mubr.msk.f32.mxu1 %vm2143_vm2, %v2142_v3  ;;  %v227_v10 = vld [vmem:[%s3784_s4 + $0x68] sm:$0xff]  ;;  %v90_v13 = vld [vmem:[%s3781_s2 + $0x120] sm:$0xff]  ;;  %v92_v14 = vld [vmem:[%s3781_s2 + $0x130] sm:$0xff]  ;;  %v1693_v15 = vpack.c.bf16 %v223_v8, %v220_v7  ;;  %v1659_v16 = vpack.c.bf16 %v93_v9, %v91_v5 }
  0x13   :  { %1688 = vmatprep.subr.bf16.mxu1 %v1687_v60  ;;  %v95_v17 = vld [vmem:[%s3781_s2 + $0x148] sm:$0xff]  ;;  %v1695_v18 = vpack.c.bf16 %v230_v11, %v227_v10  ;;  %v226_v19 = vld [vmem:[%s3784_s4 + $0x60] sm:$0xff]  ;;  %v229_v20 = vld [vmem:[%s3784_s4 + $0x78] sm:$0xff]  ;;  %v1661_v24 = vpack.c.bf16 %v92_v14, %v90_v13 }
  0x14   :  { %1610 = vmatmul.mubr.msk.f32.vlgmr.msra.gmra.mrb[2].mxu1 %vm291_vm1, %v53_v54  ;;  %v97_v21 = vld [vmem:[%s3781_s2 + $0x158] sm:$0xff]  ;;  %v236_v23 = vld [vmem:[%s3784_s4 + $0xb0] sm:$0xff]  ;;  %v94_v25 = vld [vmem:[%s3781_s2 + $0x140] sm:$0xff]  ;;  %v1697_v27 = vpack.c.bf16 %v229_v20, %v226_v19 }
  0x15   :  { %1642 = vmatpush1.bf16.msra.mxu0 %v1641_v32  ;;  %1690 = vmatpush1.bf16.msra.mxu1 %v1689_v2  ;;  %v233_v22 = vld [vmem:[%s3784_s4 + $0x98] sm:$0xff]  ;;  %v96_v26 = vld [vmem:[%s3781_s2 + $0x150] sm:$0xff]  ;;  %v1663_v28 = vpack.c.bf16 %v97_v21, %v95_v17  ;;  %v99_v29 = vld [vmem:[%s3781_s2 + $0x168] sm:$0xff] }
  0x16   :  { %1644 = vmatprep.subr.bf16.mxu0 %v1643_v33  ;;  %1692 = vmatprep.subr.bf16.mxu1 %v1691_v6  ;;  %v1699_v30 = vpack.c.bf16 %v236_v23, %v233_v22  ;;  %v232_v31 = vld [vmem:[%s3784_s4 + $0x90] sm:$0xff]  ;;  %v235_v32 = vld [vmem:[%s3784_s4 + $0xa8] sm:$0xff]  ;;  %v101_v33 = vld [vmem:[%s3781_s2 + $0x178] sm:$0xff]  ;;  %v1665_v36 = vpack.c.bf16 %v96_v26, %v94_v25 }
  0x17   :  { %v239_v34 = vld [vmem:[%s3784_s4 + $0xc8] sm:$0xff]  ;;  %v242_v35 = vld [vmem:[%s3784_s4 + $0xe0] sm:$0xff]  ;;  %v1667_v40 = vpack.c.bf16 %v101_v33, %v99_v29  ;;  %v241_v45 = vld [vmem:[%s3784_s4 + $0xd8] sm:$0xff] }
  0x18   :  { %v98_v37 = vld [vmem:[%s3781_s2 + $0x160] sm:$0xff]  ;;  %v103_v41 = vld [vmem:[%s3781_s2 + $0x188] sm:$0xff]  ;;  %v1703_v43 = vpack.c.bf16 %v242_v35, %v239_v34  ;;  %v105_v46 = vld [vmem:[%s3781_s2 + $0x198] sm:$0xff] }
  0x19   :  { %1646 = vmatpush1.bf16.msra.mxu0 %v1645_v38  ;;  %1694 = vmatpush1.bf16.msra.mxu1 %v1693_v15  ;;  %v100_v38 = vld [vmem:[%s3781_s2 + $0x170] sm:$0xff]  ;;  %v238_v44 = vld [vmem:[%s3784_s4 + $0xc0] sm:$0xff]  ;;  %v245_v47 = vld [vmem:[%s3784_s4 + $0xf8] sm:$0xff]  ;;  %v1671_v53 = vpack.c.bf16 %v105_v46, %v103_v41 }
  0x1a   :  { %1648 = vmatprep.subr.bf16.mxu0 %v1647_v39  ;;  %1696 = vmatprep.subr.bf16.mxu1 %v1695_v18  ;;  %v1701_v39 = vpack.c.bf16 %v235_v32, %v232_v31  ;;  %v248_v48 = vld [vmem:[%s3784_s4 + $0x110] sm:$0xff]  ;;  %v1669_v49 = vpack.c.bf16 %v100_v38, %v98_v37  ;;  %v102_v50 = vld [vmem:[%s3781_s2 + $0x180] sm:$0xff]  ;;  %v1705_v52 = vpack.c.bf16 %v241_v45, %v238_v44  ;;  %v107_v54 = vld [vmem:[%s3781_s2 + $0x1a8] sm:$0xff] }
  0x1b   :  { %v244_v56 = vld [vmem:[%s3784_s4 + $0xf0] sm:$0xff]  ;;  %v247_v57 = vld [vmem:[%s3784_s4 + $0x108] sm:$0xff]  ;;  %v109_v58 = vld [vmem:[%s3781_s2 + $0x1b8] sm:$0xff] }
  0x1c   :  { %v251_v59 = vld [vmem:[%s3784_s4 + $0x128] sm:$0xff]  ;;  %v254_v60 = vld [vmem:[%s3784_s4 + $0x140] sm:$0xff]  ;;  %v1709_v0 = vpack.c.bf16 %v247_v57, %v244_v56  ;;  %v1675_v1 = vpack.c.bf16 %v109_v58, %v107_v54  ;;  %v253_v6 = vld [vmem:[%s3784_s4 + $0x138] sm:$0xff] }
  0x1d   :  { %1650 = vmatpush1.bf16.msra.mxu0 %v1649_v51  ;;  %1698 = vmatpush1.bf16.msra.mxu1 %v1697_v27  ;;  %v104_v51 = vld [vmem:[%s3781_s2 + $0x190] sm:$0xff]  ;;  %v106_v62 = vld [vmem:[%s3781_s2 + $0x1a0] sm:$0xff]  ;;  %v111_v2 = vld [vmem:[%s3781_s2 + $0x1c8] sm:$0xff] }
  0x1e   :  { %1652 = vmatprep.subr.bf16.mxu0 %v1651_v55  ;;  %1700 = vmatprep.subr.bf16.mxu1 %v1699_v30  ;;  %v1707_v55 = vpack.c.bf16 %v248_v48, %v245_v47  ;;  %v1673_v61 = vpack.c.bf16 %v104_v51, %v102_v50  ;;  %v250_v5 = vld [vmem:[%s3784_s4 + $0x120] sm:$0xff]  ;;  %v113_v7 = vld [vmem:[%s3781_s2 + $0x1d8] sm:$0xff]  ;;  %v260_v9 = vld [vmem:[%s3784_s4 + $0x170] sm:$0xff]  ;;  %v2144_v50 = vmov 0.0|0.0  }
  0x1f   :  { %v257_v8 = vld [vmem:[%s3784_s4 + $0x158] sm:$0xff]  ;;  %v110_v11 = vld [vmem:[%s3781_s2 + $0x1c0] sm:$0xff]  ;;  %v1713_v13 = vpack.c.bf16 %v253_v6, %v250_v5  ;;  %v1679_v14 = vpack.c.bf16 %v113_v7, %v111_v2  ;;  %v115_v15 = vld [vmem:[%s3781_s2 + $0x1e8] sm:$0xff] }
  0x20   :  { %v256_v17 = vld [vmem:[%s3784_s4 + $0x150] sm:$0xff]  ;;  %v259_v18 = vld [vmem:[%s3784_s4 + $0x168] sm:$0xff]  ;;  %v117_v19 = vld [vmem:[%s3781_s2 + $0x1f8] sm:$0xff] }
  0x21   :  { %1654 = vmatpush1.bf16.msra.mxu0 %v1653_v63  ;;  %1702 = vmatpush1.bf16.msra.mxu1 %v1701_v39  ;;  %v108_v63 = vld [vmem:[%s3781_s2 + $0x1b0] sm:$0xff]  ;;  %v263_v20 = vld [vmem:[%s3784_s4 + $0x188] sm:$0xff]  ;;  %v266_v21 = vld [vmem:[%s3784_s4 + $0x1a0] sm:$0xff]  ;;  %v1683_v25 = vpack.c.bf16 %v117_v19, %v115_v15 }
  0x22   :  { %1656 = vmatprep.subr.bf16.mxu0 %v1655_v4  ;;  %1704 = vmatprep.subr.bf16.mxu1 %v1703_v43  ;;  %v1711_v4 = vpack.c.bf16 %v254_v60, %v251_v59  ;;  %v1677_v10 = vpack.c.bf16 %v108_v63, %v106_v62  ;;  %v114_v23 = vld [vmem:[%s3781_s2 + $0x1e0] sm:$0xff]  ;;  %v116_v26 = vld [vmem:[%s3781_s2 + $0x1f0] sm:$0xff]  ;;  %v1719_v27 = vpack.c.bf16 %v266_v21, %v263_v20  ;;  %v265_v29 = vld [vmem:[%s3784_s4 + $0x198] sm:$0xff] }
  0x23   :  { %v269_v30 = vld [vmem:[%s3784_s4 + $0x1b8] sm:$0xff]  ;;  %v272_v31 = vld [vmem:[%s3784_s4 + $0x1d0] sm:$0xff]  ;;  %v1685_v32 = vpack.c.bf16 %v116_v26, %v114_v23  ;;  %v275_v37 = vld [vmem:[%s3784_s4 + $0x1e8] sm:$0xff] }
  0x24   :  { %v1723_v34 = vpack.c.bf16 %v272_v31, %v269_v30  ;;  %v268_v35 = vld [vmem:[%s3784_s4 + $0x1b0] sm:$0xff]  ;;  %v278_v38 = vld [vmem:[%s3784_s4 + $0x200] sm:$0xff]  ;;  %v277_v43 = vld [vmem:[%s3784_s4 + $0x1f8] sm:$0xff] }
  0x25   :  { %1658 = vmatpush1.bf16.msra.mxu0 %v1657_v12  ;;  %1706 = vmatpush1.bf16.msra.mxu1 %v1705_v52  ;;  %v112_v12 = vld [vmem:[%s3781_s2 + $0x1d0] sm:$0xff]  ;;  %v274_v41 = vld [vmem:[%s3784_s4 + $0x1e0] sm:$0xff]  ;;  %v281_v45 = vld [vmem:[%s3784_s4 + $0x218] sm:$0xff] }
  0x26   :  { %1660 = vmatprep.subr.bf16.mxu0 %v1659_v16  ;;  %1708 = vmatprep.subr.bf16.mxu1 %v1707_v55  ;;  %v1715_v16 = vpack.c.bf16 %v260_v9, %v257_v8  ;;  %v1681_v22 = vpack.c.bf16 %v112_v12, %v110_v11  ;;  %v1729_v44 = vpack.c.bf16 %v277_v43, %v274_v41  ;;  %v284_v46 = vld [vmem:[%s3784_s4 + $0x230] sm:$0xff]  ;;  %v612_v51 = vld [vmem:[%s3786_s7 + $0x8] sm:$0xff]  ;;  %v615_v55 = vld [vmem:[%s3786_s7 + $0x20] sm:$0xff] }
  0x27   :  { %v1731_v47 = vpack.c.bf16 %v284_v46, %v281_v45  ;;  %v280_v48 = vld [vmem:[%s3784_s4 + $0x210] sm:$0xff]  ;;  %v616_v52 = vld [vmem:[%s3786_s7 + $0x28] sm:$0xff]  ;;  %v619_v60 = vld [vmem:[%s3786_s7 + $0x40] sm:$0xff] }
  0x28   :  { %v1771_v54 = vpack.c.bf16 %v616_v52, %v612_v51  ;;  %v620_v56 = vld [vmem:[%s3786_s7 + $0x48] sm:$0xff]  ;;  %v627_v2 = vld [vmem:[%s3786_s7 + $0x80] sm:$0xff] }
  0x29   :  { %1662 = vmatpush1.bf16.msra.mxu0 %v1661_v24  ;;  %1710 = vmatpush1.bf16.msra.mxu1 %v1709_v0  ;;  %v1717_v24 = vpack.c.bf16 %v259_v18, %v256_v17  ;;  %v624_v57 = vld [vmem:[%s3786_s7 + $0x68] sm:$0xff]  ;;  %v635_v9 = vld [vmem:[%s3786_s7 + $0xc0] sm:$0xff] }
  0x2a   :  { %1664 = vmatprep.subr.bf16.mxu0 %v1663_v28  ;;  %1712 = vmatprep.subr.bf16.mxu1 %v1711_v4  ;;  %v262_v28 = vld [vmem:[%s3784_s4 + $0x180] sm:$0xff]  ;;  %v1775_v59 = vpack.c.bf16 %v624_v57, %v620_v56  ;;  %v628_v62 = vld [vmem:[%s3786_s7 + $0x88] sm:$0xff] }
  0x2b   :  { %v1721_v33 = vpack.c.bf16 %v265_v29, %v262_v28  ;;  %v632_v63 = vld [vmem:[%s3786_s7 + $0xa8] sm:$0xff]  ;;  %v631_v4 = vld [vmem:[%s3786_s7 + $0xa0] sm:$0xff] }
  0x2c   :  { %v636_v5 = vld [vmem:[%s3786_s7 + $0xc8] sm:$0xff]  ;;  %v1781_v7 = vpack.c.bf16 %v631_v4, %v627_v2  ;;  %v643_v15 = vld [vmem:[%s3786_s7 + $0x100] sm:$0xff] }
  0x2d   :  { %1666 = vmatpush1.bf16.msra.mxu0 %v1665_v36  ;;  %1714 = vmatpush1.bf16.msra.mxu1 %v1713_v13  ;;  %v271_v36 = vld [vmem:[%s3784_s4 + $0x1c8] sm:$0xff]  ;;  %v651_v21 = vld [vmem:[%s3786_s7 + $0x140] sm:$0xff] }
  0x2e   :  { %1668 = vmatprep.subr.bf16.mxu0 %v1667_v40  ;;  %1716 = vmatprep.subr.bf16.mxu1 %v1715_v16  ;;  %v1725_v39 = vpack.c.bf16 %v271_v36, %v268_v35  ;;  %v1727_v40 = vpack.c.bf16 %v278_v38, %v275_v37  ;;  %v640_v6 = vld [vmem:[%s3786_s7 + $0xe8] sm:$0xff]  ;;  %v647_v16 = vld [vmem:[%s3786_s7 + $0x120] sm:$0xff] }
  0x2f   :  { %v1783_v8 = vpack.c.bf16 %v640_v6, %v636_v5  ;;  %v644_v11 = vld [vmem:[%s3786_s7 + $0x108] sm:$0xff]  ;;  %v1789_v19 = vpack.c.bf16 %v647_v16, %v643_v15  ;;  %v663_v28 = vld [vmem:[%s3786_s7 + $0x1a0] sm:$0xff]  ;;  %v120_v15 = vlaneseq }
  0x30   :  { %v648_v12 = vld [vmem:[%s3786_s7 + $0x128] sm:$0xff]  ;;  %v683_v46 = vld [vmem:[%s3786_s7 + $0x240] sm:$0xff] }
  0x31   :  { %1670 = vmatpush1.bf16.msra.mxu0 %v1669_v49  ;;  %1718 = vmatpush1.bf16.msra.mxu1 %v1717_v24  ;;  %v652_v17 = vld [vmem:[%s3786_s7 + $0x148] sm:$0xff]  ;;  %v707_v2 = vld [vmem:[%s3786_s7 + $0x300] sm:$0xff]  ;;  %v2764_v16 = vshrl.u32 %v120_v15, 7 }
  0x32   :  { %1672 = vmatprep.subr.bf16.mxu0 %v1671_v53  ;;  %1720 = vmatprep.subr.bf16.mxu1 %v1719_v27  ;;  %v611_v53 = vld [vmem:[%s3786_s7] sm:$0xff]  ;;  %v656_v18 = vld [vmem:[%s3786_s7 + $0x168] sm:$0xff] }
  0x33   :  { %v1773_v58 = vpack.c.bf16 %v615_v55, %v611_v53  ;;  %v1791_v20 = vpack.c.bf16 %v656_v18, %v652_v17  ;;  %v660_v23 = vld [vmem:[%s3786_s7 + $0x188] sm:$0xff]  ;;  %v659_v27 = vld [vmem:[%s3786_s7 + $0x180] sm:$0xff]  ;;  %v2767_v17 = vsub.s32 0, %v2764_v16 }
  0x34   :  { %v664_v24 = vld [vmem:[%s3786_s7 + $0x1a8] sm:$0xff]  ;;  %v1797_v31 = vpack.c.bf16 %v663_v28, %v659_v27  ;;  %v695_v55 = vld [vmem:[%s3786_s7 + $0x2a0] sm:$0xff] }
  0x35   :  { %1674 = vmatpush1.bf16.msra.mxu0 %v1673_v61  ;;  %1722 = vmatpush1.bf16.msra.mxu1 %v1721_v33  ;;  %v623_v61 = vld [vmem:[%s3786_s7 + $0x60] sm:$0xff]  ;;  %v1795_v26 = vpack.c.bf16 %v664_v24, %v660_v23  ;;  %v668_v29 = vld [vmem:[%s3786_s7 + $0x1c8] sm:$0xff] }
  0x36   :  { %1676 = vmatprep.subr.bf16.mxu0 %v1675_v1  ;;  %1724 = vmatprep.subr.bf16.mxu1 %v1723_v34  ;;  %v1777_v0 = vpack.c.bf16 %v623_v61, %v619_v60  ;;  %v1779_v1 = vpack.c.bf16 %v632_v63, %v628_v62  ;;  %v672_v30 = vld [vmem:[%s3786_s7 + $0x1e8] sm:$0xff]  ;;  %v667_v33 = vld [vmem:[%s3786_s7 + $0x1c0] sm:$0xff] }
  0x37   :  { %v671_v34 = vld [vmem:[%s3786_s7 + $0x1e0] sm:$0xff]  ;;  %v676_v35 = vld [vmem:[%s3786_s7 + $0x208] sm:$0xff] }
  0x38   :  { %v680_v36 = vld [vmem:[%s3786_s7 + $0x228] sm:$0xff]  ;;  %v1801_v37 = vpack.c.bf16 %v671_v34, %v667_v33  ;;  %v699_v60 = vld [vmem:[%s3786_s7 + $0x2c0] sm:$0xff]  ;;  %v228_v34 = vld [vmem:[%s3784_s4 + $0x70] sm:$0xff] }
  0x39   :  { %1678 = vmatpush1.bf16.msra.mxu0 %v1677_v10  ;;  %1726 = vmatpush1.bf16.msra.mxu1 %v1725_v39  ;;  %v639_v10 = vld [vmem:[%s3786_s7 + $0xe0] sm:$0xff]  ;;  %v1803_v38 = vpack.c.bf16 %v680_v36, %v676_v35  ;;  %v684_v41 = vld [vmem:[%s3786_s7 + $0x248] sm:$0xff] }
  0x3a   :  { %1680 = vmatprep.subr.bf16.mxu0 %v1679_v14  ;;  %1728 = vmatprep.subr.bf16.mxu1 %v1727_v40  ;;  %v1785_v13 = vpack.c.bf16 %v639_v10, %v635_v9  ;;  %v1787_v14 = vpack.c.bf16 %v648_v12, %v644_v11  ;;  %v675_v39 = vld [vmem:[%s3786_s7 + $0x200] sm:$0xff]  ;;  %v688_v43 = vld [vmem:[%s3786_s7 + $0x268] sm:$0xff] }
  0x3b   :  { %v679_v40 = vld [vmem:[%s3786_s7 + $0x220] sm:$0xff]  ;;  %v1807_v45 = vpack.c.bf16 %v688_v43, %v684_v41  ;;  %v700_v56 = vld [vmem:[%s3786_s7 + $0x2c8] sm:$0xff] }
  0x3c   :  { %v704_v57 = vld [vmem:[%s3786_s7 + $0x2e8] sm:$0xff]  ;;  %v703_v61 = vld [vmem:[%s3786_s7 + $0x2e0] sm:$0xff] }
  0x3d   :  { %1682 = vmatpush1.bf16.msra.mxu0 %v1681_v22  ;;  %1730 = vmatpush1.bf16.msra.mxu1 %v1729_v44  ;;  %v655_v22 = vld [vmem:[%s3786_s7 + $0x160] sm:$0xff]  ;;  %v1805_v44 = vpack.c.bf16 %v679_v40, %v675_v39  ;;  %v708_v62 = vld [vmem:[%s3786_s7 + $0x308] sm:$0xff]  ;;  %v240_v40 = vld [vmem:[%s3784_s4 + $0xd0] sm:$0xff] }
  0x3e   :  { %1684 = vmatprep.subr.bf16.mxu0 %v1683_v25  ;;  %1732 = vmatprep.subr.bf16.mxu1 %v1731_v47  ;;  %v1793_v25 = vpack.c.bf16 %v655_v22, %v651_v21  ;;  %v687_v47 = vld [vmem:[%s3786_s7 + $0x260] sm:$0xff]  ;;  %v712_v63 = vld [vmem:[%s3786_s7 + $0x328] sm:$0xff] }
  0x3f   :  { %v1809_v51 = vpack.c.bf16 %v687_v47, %v683_v46  ;;  %v711_v4 = vld [vmem:[%s3786_s7 + $0x320] sm:$0xff]  ;;  %v716_v5 = vld [vmem:[%s3786_s7 + $0x348] sm:$0xff]  ;;  %v252_v47 = vld [vmem:[%s3784_s4 + $0x130] sm:$0xff] }
  0x40   :  { %v720_v6 = vld [vmem:[%s3786_s7 + $0x368] sm:$0xff]  ;;  %v715_v9 = vld [vmem:[%s3786_s7 + $0x340] sm:$0xff] }
  0x41   :  { %1686 = vmatpush1.bf16.msra.mxu0 %v1685_v32  ;;  %v1799_v32 = vpack.c.bf16 %v672_v30, %v668_v29  ;;  %v719_v10 = vld [vmem:[%s3786_s7 + $0x360] sm:$0xff]  ;;  %v724_v11 = vld [vmem:[%s3786_s7 + $0x388] sm:$0xff] }
  0x42   :  { %1772 = vmatprep.subr.bf16.mxu0 %v1771_v54  ;;  %v691_v54 = vld [vmem:[%s3786_s7 + $0x280] sm:$0xff]  ;;  %v728_v12 = vld [vmem:[%s3786_s7 + $0x3a8] sm:$0xff] }
  0x43   :  { %v118_v18 = vld [vmem:[%s3787_s3] sm:$0x3]  ;;  %v231_v35 = vld [vmem:[%s3784_s4 + $0x88] sm:$0xff] }
  0x44   :  { %206 = vmatmul.mubr.f32.vlgmr.msra.gmra.mrb[0].mxu0 %v2313_v42  ;;  %v283_v42 = vld [vmem:[%s3784_s4 + $0x228] sm:$0xff]  ;;  %v1742_v36 = vpack.c.bf16 %v231_v35, %v228_v34 }
  0x45   :  { %v1733_v49 = vpack.c.bf16 %v283_v42, %v280_v48  ;;  %1774 = vmatpush1.bf16.msra.mxu0 %v1773_v58  ;;  %v692_v48 = vld [vmem:[%s3786_s7 + $0x288] sm:$0xff]  ;;  %v1813_v58 = vpack.c.bf16 %v695_v55, %v691_v54  ;;  %v264_v54 = vld [vmem:[%s3784_s4 + $0x190] sm:$0xff] }
  0x46   :  { %1776 = vmatprep.subr.bf16.mxu0 %v1775_v59  ;;  %v696_v42 = vld [vmem:[%s3786_s7 + $0x2a8] sm:$0xff]  ;;  %v1815_v59 = vpack.c.bf16 %v704_v57, %v700_v56  ;;  %v270_v57 = vld [vmem:[%s3784_s4 + $0x1c0] sm:$0xff] }
  0x47   :  { %1734 = vmatpush1.bf16.msra.mxu1 %v1733_v49  ;;  %v1811_v53 = vpack.c.bf16 %v696_v42, %v692_v48  ;;  %v243_v41 = vld [vmem:[%s3784_s4 + $0xe8] sm:$0xff] }
  0x48   :  { %1735 = vmatprep.subr.bf16.mxu1 %v2144_v50  ;;  %v1748_v43 = vpack.c.bf16 %v243_v41, %v240_v40  ;;  %v255_v48 = vld [vmem:[%s3784_s4 + $0x148] sm:$0xff] }
  0x49   :  { %1778 = vmatpush1.bf16.msra.mxu0 %v1777_v0  ;;  %v1817_v0 = vpack.c.bf16 %v703_v61, %v699_v60  ;;  %v1754_v42 = vpack.c.bf16 %v255_v48, %v252_v47  ;;  %v267_v55 = vld [vmem:[%s3784_s4 + $0x1a8] sm:$0xff]  ;;  %v276_v60 = vld [vmem:[%s3784_s4 + $0x1f0] sm:$0xff] }
  0x4a   :  { %1780 = vmatprep.subr.bf16.mxu0 %v1779_v1  ;;  %v1819_v1 = vpack.c.bf16 %v712_v63, %v708_v62  ;;  %v1760_v56 = vpack.c.bf16 %v267_v55, %v264_v54  ;;  %v279_v61 = vld [vmem:[%s3784_s4 + $0x208] sm:$0xff]  ;;  %v282_v63 = vld [vmem:[%s3784_s4 + $0x220] sm:$0xff] }
  0x4b   :  { %v1766_v62 = vpack.c.bf16 %v279_v61, %v276_v60  ;;  %v800_v60 = vld [vmem:[%s3786_s7 + $0x5e8] sm:$0xff] }
  0x4d   :  { %1782 = vmatpush1.bf16.msra.mxu0 %v1781_v7  ;;  %v1821_v7 = vpack.c.bf16 %v711_v4, %v707_v2  ;;  %v723_v2 = vld [vmem:[%s3786_s7 + $0x380] sm:$0xff] }
  0x4e   :  { %1784 = vmatprep.subr.bf16.mxu0 %v1783_v8  ;;  %v1823_v8 = vpack.c.bf16 %v720_v6, %v716_v5  ;;  %v727_v4 = vld [vmem:[%s3786_s7 + $0x3a0] sm:$0xff]  ;;  %v732_v6 = vld [vmem:[%s3786_s7 + $0x3c8] sm:$0xff] }
  0x4f   :  { %v1829_v5 = vpack.c.bf16 %v727_v4, %v723_v2  ;;  %v618_v2 = vld [vmem:[%s3786_s7 + $0x38] sm:$0xff] }
  0x51   :  { %1786 = vmatpush1.bf16.msra.mxu0 %v1785_v13  ;;  %v1825_v13 = vpack.c.bf16 %v719_v10, %v715_v9  ;;  %v731_v9 = vld [vmem:[%s3786_s7 + $0x3c0] sm:$0xff] }
  0x52   :  { %1788 = vmatprep.subr.bf16.mxu0 %v1787_v14  ;;  %v1827_v14 = vpack.c.bf16 %v728_v12, %v724_v11  ;;  %v735_v10 = vld [vmem:[%s3786_s7 + $0x3e0] sm:$0xff]  ;;  %v740_v12 = vld [vmem:[%s3786_s7 + $0x408] sm:$0xff] }
  0x53   :  { %v1833_v11 = vpack.c.bf16 %v735_v10, %v731_v9 }
  0x55   :  { %1790 = vmatpush1.bf16.msra.mxu0 %v1789_v19  ;;  %v2773_v19 = vsub.s32 1, %v2764_v16 }
  0x56   :  { %1792 = vmatprep.subr.bf16.mxu0 %v1791_v20  ;;  %v123_v20 = vrot.slane %v118_v18, %v2767_v17 }
  0x57   :  { %v127_v21 = vrot.slane %v118_v18, %v2773_v19  ;;  %v743_v18 = vld [vmem:[%s3786_s7 + $0x420] sm:$0xff] }
  0x59   :  { %1794 = vmatpush1.bf16.msra.mxu0 %v1793_v25  ;;  %v216_v25 = vld [vmem:[%s3784_s4 + $0x10] sm:$0xff] }
  0x5a   :  { %1796 = vmatprep.subr.bf16.mxu0 %v1795_v26  ;;  %v219_v26 = vld [vmem:[%s3784_s4 + $0x28] sm:$0xff] }
  0x5b   :  { %v1736_v29 = vpack.c.bf16 %v219_v26, %v216_v25  ;;  %v751_v25 = vld [vmem:[%s3786_s7 + $0x460] sm:$0xff]  ;;  %v756_v26 = vld [vmem:[%s3786_s7 + $0x488] sm:$0xff] }
  0x5d   :  { %1798 = vmatpush1.bf16.msra.mxu0 %v1797_v31  ;;  %v222_v31 = vld [vmem:[%s3784_s4 + $0x40] sm:$0xff] }
  0x5e   :  { %1800 = vmatprep.subr.bf16.mxu0 %v1799_v32  ;;  %v225_v32 = vld [vmem:[%s3784_s4 + $0x58] sm:$0xff] }
  0x5f   :  { %v1739_v33 = vpack.c.bf16 %v225_v32, %v222_v31  ;;  %v759_v31 = vld [vmem:[%s3786_s7 + $0x4a0] sm:$0xff]  ;;  %v764_v32 = vld [vmem:[%s3786_s7 + $0x4c8] sm:$0xff] }
  0x61   :  { %1802 = vmatpush1.bf16.msra.mxu0 %v1801_v37  ;;  %v234_v37 = vld [vmem:[%s3784_s4 + $0xa0] sm:$0xff] }
  0x62   :  { %1804 = vmatprep.subr.bf16.mxu0 %v1803_v38  ;;  %v237_v38 = vld [vmem:[%s3784_s4 + $0xb8] sm:$0xff] }
  0x63   :  { %v1745_v39 = vpack.c.bf16 %v237_v38, %v234_v37  ;;  %v767_v37 = vld [vmem:[%s3786_s7 + $0x4e0] sm:$0xff]  ;;  %v772_v38 = vld [vmem:[%s3786_s7 + $0x508] sm:$0xff] }
  0x65   :  { %1806 = vmatpush1.bf16.msra.mxu0 %v1805_v44  ;;  %v246_v44 = vld [vmem:[%s3784_s4 + $0x100] sm:$0xff] }
  0x66   :  { %1808 = vmatprep.subr.bf16.mxu0 %v1807_v45  ;;  %v249_v45 = vld [vmem:[%s3784_s4 + $0x118] sm:$0xff] }
  0x67   :  { %v1751_v46 = vpack.c.bf16 %v249_v45, %v246_v44  ;;  %v775_v44 = vld [vmem:[%s3786_s7 + $0x520] sm:$0xff]  ;;  %v780_v45 = vld [vmem:[%s3786_s7 + $0x548] sm:$0xff] }
  0x69   :  { %1810 = vmatpush1.bf16.msra.mxu0 %v1809_v51  ;;  %v258_v51 = vld [vmem:[%s3784_s4 + $0x160] sm:$0xff] }
  0x6a   :  { %1812 = vmatprep.subr.bf16.mxu0 %v1811_v53 }
  0x6d   :  { %1814 = vmatpush1.bf16.msra.mxu0 %v1813_v58  ;;  %v273_v58 = vld [vmem:[%s3784_s4 + $0x1d8] sm:$0xff] }
  0x6e   :  { %1816 = vmatprep.subr.bf16.mxu0 %v1815_v59  ;;  %v1763_v59 = vpack.c.bf16 %v273_v58, %v270_v57  ;;  %v791_v57 = vld [vmem:[%s3786_s7 + $0x5a0] sm:$0xff] }
  0x71   :  { %1818 = vmatpush1.bf16.msra.mxu0 %v1817_v0  ;;  %v285_v0 = vld [vmem:[%s3784_s4 + $0x238] sm:$0xff] }
  0x72   :  { %1820 = vmatprep.subr.bf16.mxu0 %v1819_v1  ;;  %v1769_v1 = vpack.c.bf16 %v285_v0, %v282_v63  ;;  %v799_v63 = vld [vmem:[%s3786_s7 + $0x5e0] sm:$0xff] }
  0x75   :  { %1822 = vmatpush1.bf16.msra.mxu0 %v1821_v7  ;;  %v736_v7 = vld [vmem:[%s3786_s7 + $0x3e8] sm:$0xff] }
  0x76   :  { %1824 = vmatprep.subr.bf16.mxu0 %v1823_v8  ;;  %v1831_v8 = vpack.c.bf16 %v736_v7, %v732_v6 }
  0x79   :  { %1826 = vmatpush1.bf16.msra.mxu0 %v1825_v13  ;;  %v744_v13 = vld [vmem:[%s3786_s7 + $0x428] sm:$0xff] }
  0x7a   :  { %1828 = vmatprep.subr.bf16.mxu0 %v1827_v14  ;;  %v739_v14 = vld [vmem:[%s3786_s7 + $0x400] sm:$0xff]  ;;  %v1835_v15 = vpack.c.bf16 %v744_v13, %v740_v12 }
  0x7d   :  { %1830 = vmatpush1.bf16.msra.mxu0 %v1829_v5  ;;  %v588_v5 = vld [vmem:[%s3788_s6] sm:$0x7] }
  0x7e   :  { %1832 = vmatprep.subr.bf16.mxu0 %v1831_v8  ;;  %v593_v6 = vrot.slane %v588_v5, %v2767_v17  ;;  %v597_v7 = vrot.slane %v588_v5, %v2773_v19 }
  0x81   :  { %1834 = vmatpush1.bf16.msra.mxu0 %v1833_v11 }
  0xe7   :  { %v2714_v49 = vpop.f32.mrb[2].mxu1 }
  0xe8   :  { %v1611_v52 = vpop.f32.mrb[3].mxu1 }
  0xe9   :  { %v261_v52 = vld [vmem:[%s3784_s4 + $0x178] sm:$0xff] }
  0xea   :  { %v1757_v53 = vpack.c.bf16 %v261_v52, %v258_v51  ;;  %v783_v51 = vld [vmem:[%s3786_s7 + $0x560] sm:$0xff]  ;;  %v788_v52 = vld [vmem:[%s3786_s7 + $0x588] sm:$0xff] }
 0x117   :  { %v207_v22 = vpop.f32.mrb[0].mxu0 }
 0x118   :  { %v2777_v23 = vadd.f32 %v207_v22, %v123_v20  ;;  %v209_v24 = vpop.f32.mrb[1].mxu0  ;;  %v748_v20 = vld [vmem:[%s3786_s7 + $0x448] sm:$0xff]  ;;  %v1837_v22 = vpack.c.bf16 %v743_v18, %v739_v14  ;;  %v1113_v18 = vld [vmem:[%s3789_s9] sm:$0xff] }
 0x119   :  { %v210_v27 = vadd.f32 %v209_v24, %v127_v21  ;;  %v752_v21 = vld [vmem:[%s3786_s7 + $0x468] sm:$0xff]  ;;  %v747_v24 = vld [vmem:[%s3786_s7 + $0x440] sm:$0xff] }
 0x11a   :  { %v212_v30 = vmax.f32 %v2777_v23, 0.0  ;;  %v1839_v23 = vpack.c.bf16 %v752_v21, %v748_v20  ;;  %v1114_v14 = vld [vmem:[%s3789_s9 + $0x8] sm:$0xff]  ;;  %v1115_v21 = vld [vmem:[%s3789_s9 + $0x10] sm:$0xff] }
 0x11b   :  { %v213_v28 = vmax.f32 %v210_v27, 0.0  ;;  %v760_v27 = vld [vmem:[%s3786_s7 + $0x4a8] sm:$0xff] }
 0x11d   :  { %1594 = vmatprep.mubr.msk.f32.mxu1 %vm443_vm3, %v213_v28 }
 0x11e   :  { %512 = vmatmul.mubr.f32.vlgmr.msra.gmra.mrb[0].mxu1 %v212_v30 }
 0x11f   :  { %1737 = vmatpush1.bf16.msra.mxu1 %v1736_v29  ;;  %1595 = vmatprep.mubr.msk.f32.mxu1 %vm443_vm3, %v213_v28  ;;  %v1841_v28 = vpack.c.bf16 %v751_v25, %v747_v24  ;;  %v1843_v29 = vpack.c.bf16 %v760_v27, %v756_v26  ;;  %v1965_v24 = vpack.c.bf16 %v1115_v21, %v1113_v18  ;;  %v1117_v26 = vld [vmem:[%s3789_s9 + $0x20] sm:$0xff]  ;;  %v1119_v27 = vld [vmem:[%s3789_s9 + $0x30] sm:$0xff] }
 0x120   :  { %1738 = vmatprep.subr.bf16.mxu1 %v2144_v50  ;;  %v661_v21 = vld [vmem:[%s3786_s7 + $0x190] sm:$0xff] }
 0x123   :  { %1740 = vmatpush1.bf16.msra.mxu1 %v1739_v33  ;;  %v768_v33 = vld [vmem:[%s3786_s7 + $0x4e8] sm:$0xff] }
 0x124   :  { %1741 = vmatprep.subr.bf16.mxu1 %v2144_v50  ;;  %v1847_v35 = vpack.c.bf16 %v768_v33, %v764_v32  ;;  %v1121_v32 = vld [vmem:[%s3789_s9 + $0x40] sm:$0xff]  ;;  %v1123_v33 = vld [vmem:[%s3789_s9 + $0x50] sm:$0xff] }
 0x127   :  { %1743 = vmatpush1.bf16.msra.mxu1 %v1742_v36  ;;  %v763_v36 = vld [vmem:[%s3786_s7 + $0x4c0] sm:$0xff] }
 0x128   :  { %1744 = vmatprep.subr.bf16.mxu1 %v2144_v50  ;;  %v1849_v40 = vpack.c.bf16 %v767_v37, %v763_v36 }
 0x12b   :  { %1746 = vmatpush1.bf16.msra.mxu1 %v1745_v39  ;;  %v776_v39 = vld [vmem:[%s3786_s7 + $0x528] sm:$0xff] }
 0x12c   :  { %1747 = vmatprep.subr.bf16.mxu1 %v2144_v50  ;;  %v1851_v41 = vpack.c.bf16 %v776_v39, %v772_v38 }
 0x12f   :  { %1749 = vmatpush1.bf16.msra.mxu1 %v1748_v43  ;;  %v771_v43 = vld [vmem:[%s3786_s7 + $0x500] sm:$0xff] }
 0x130   :  { %1750 = vmatprep.subr.bf16.mxu1 %v2144_v50  ;;  %v1853_v47 = vpack.c.bf16 %v775_v44, %v771_v43  ;;  %v622_v43 = vld [vmem:[%s3786_s7 + $0x58] sm:$0xff] }
 0x131   :  { %v626_v44 = vld [vmem:[%s3786_s7 + $0x78] sm:$0xff] }
 0x133   :  { %1752 = vmatpush1.bf16.msra.mxu1 %v1751_v46  ;;  %v784_v46 = vld [vmem:[%s3786_s7 + $0x568] sm:$0xff] }
 0x134   :  { %1753 = vmatprep.subr.bf16.mxu1 %v2144_v50  ;;  %v1855_v48 = vpack.c.bf16 %v784_v46, %v780_v45 }
 0x137   :  { %1755 = vmatpush1.bf16.msra.mxu1 %v1754_v42  ;;  %v779_v42 = vld [vmem:[%s3786_s7 + $0x540] sm:$0xff] }
 0x138   :  { %1756 = vmatprep.subr.bf16.mxu1 %v2144_v50  ;;  %v1857_v54 = vpack.c.bf16 %v783_v51, %v779_v42  ;;  %v625_v42 = vld [vmem:[%s3786_s7 + $0x70] sm:$0xff]  ;;  %v630_v51 = vld [vmem:[%s3786_s7 + $0x98] sm:$0xff] }
 0x13b   :  { %1758 = vmatpush1.bf16.msra.mxu1 %v1757_v53  ;;  %v792_v53 = vld [vmem:[%s3786_s7 + $0x5a8] sm:$0xff] }
 0x13c   :  { %1759 = vmatprep.subr.bf16.mxu1 %v2144_v50  ;;  %v1859_v55 = vpack.c.bf16 %v792_v53, %v788_v52  ;;  %v634_v52 = vld [vmem:[%s3786_s7 + $0xb8] sm:$0xff] }
 0x13f   :  { %1761 = vmatpush1.bf16.msra.mxu1 %v1760_v56  ;;  %v787_v56 = vld [vmem:[%s3786_s7 + $0x580] sm:$0xff] }
 0x140   :  { %1762 = vmatprep.subr.bf16.mxu1 %v2144_v50  ;;  %v1861_v58 = vpack.c.bf16 %v791_v57, %v787_v56  ;;  %v633_v56 = vld [vmem:[%s3786_s7 + $0xb0] sm:$0xff]  ;;  %v638_v57 = vld [vmem:[%s3786_s7 + $0xd8] sm:$0xff] }
 0x143   :  { %1764 = vmatpush1.bf16.msra.mxu1 %v1763_v59  ;;  %v796_v59 = vld [vmem:[%s3786_s7 + $0x5c8] sm:$0xff] }
 0x144   :  { %1765 = vmatprep.subr.bf16.mxu1 %v2144_v50  ;;  %v1863_v61 = vpack.c.bf16 %v800_v60, %v796_v59 }
 0x147   :  { %1767 = vmatpush1.bf16.msra.mxu1 %v1766_v62  ;;  %v795_v62 = vld [vmem:[%s3786_s7 + $0x5c0] sm:$0xff] }
 0x148   :  { %1768 = vmatprep.subr.bf16.mxu1 %v2144_v50  ;;  %v1865_v0 = vpack.c.bf16 %v799_v63, %v795_v62  ;;  %v641_v62 = vld [vmem:[%s3786_s7 + $0xf0] sm:$0xff]  ;;  %v646_v63 = vld [vmem:[%s3786_s7 + $0x118] sm:$0xff] }
 0x14b   :  { %1770 = vmatpush1.bf16.msra.mxu1 %v1769_v1  ;;  %v614_v1 = vld [vmem:[%s3786_s7 + $0x18] sm:$0xff] }
 0x14c   :  { %1836 = vmatprep.subr.bf16.mxu1 %v1835_v15  ;;  %v1867_v4 = vpack.c.bf16 %v618_v2, %v614_v1  ;;  %v1116_v15 = vld [vmem:[%s3789_s9 + $0x18] sm:$0xff] }
 0x14d   :  { %v1963_v20 = vpack.c.bf16 %v1116_v15, %v1114_v14  ;;  %v662_v14 = vld [vmem:[%s3786_s7 + $0x198] sm:$0xff] }
 0x14e   :  { %583 = vmatmul.mubr.f32.vlgmr.msra.gmra.mrb[4].mxu1 %v212_v30  ;;  %v755_v30 = vld [vmem:[%s3786_s7 + $0x480] sm:$0xff]  ;;  %v666_v15 = vld [vmem:[%s3786_s7 + $0x1b8] sm:$0xff] }
 0x14f   :  { %960 = vmatprep.mubr.f32.mxu1 %v2142_v3  ;;  %1838 = vmatpush1.bf16.msra.mxu1 %v1837_v22  ;;  %v1845_v34 = vpack.c.bf16 %v759_v31, %v755_v30  ;;  %v1118_v22 = vld [vmem:[%s3789_s9 + $0x28] sm:$0xff]  ;;  %v1969_v30 = vpack.c.bf16 %v1119_v27, %v1117_v26  ;;  %v669_v27 = vld [vmem:[%s3786_s7 + $0x1d0] sm:$0xff] }
 0x150   :  { %1840 = vmatprep.subr.bf16.mxu1 %v1839_v23  ;;  %v1120_v23 = vld [vmem:[%s3789_s9 + $0x38] sm:$0xff]  ;;  %1964 = vmatprep.subr.bf16.mxu0 %v1963_v20  ;;  %v1891_v20 = vpack.c.bf16 %v666_v15, %v662_v14  ;;  %v1133_v15 = vld [vmem:[%s3789_s9 + $0xa0] sm:$0xff] }
 0x151   :  { %v1967_v25 = vpack.c.bf16 %v1120_v23, %v1118_v22  ;;  %v665_v22 = vld [vmem:[%s3786_s7 + $0x1b0] sm:$0xff]  ;;  %v670_v23 = vld [vmem:[%s3786_s7 + $0x1d8] sm:$0xff] }
 0x153   :  { %1842 = vmatpush1.bf16.msra.mxu1 %v1841_v28  ;;  %v1122_v28 = vld [vmem:[%s3789_s9 + $0x48] sm:$0xff] }
 0x154   :  { %1844 = vmatprep.subr.bf16.mxu1 %v1843_v29  ;;  %v1124_v29 = vld [vmem:[%s3789_s9 + $0x58] sm:$0xff] }
 0x155   :  { %v1971_v31 = vpack.c.bf16 %v1124_v29, %v1122_v28  ;;  %v673_v28 = vld [vmem:[%s3786_s7 + $0x1f0] sm:$0xff]  ;;  %v678_v29 = vld [vmem:[%s3786_s7 + $0x218] sm:$0xff] }
 0x157   :  { %1846 = vmatpush1.bf16.msra.mxu1 %v1845_v34  ;;  %v1973_v34 = vpack.c.bf16 %v1123_v33, %v1121_v32  ;;  %v677_v33 = vld [vmem:[%s3786_s7 + $0x210] sm:$0xff] }
 0x158   :  { %1848 = vmatprep.subr.bf16.mxu1 %v1847_v35  ;;  %v600_v35 = vsub.s32 2, %v2764_v16 }
 0x15a   :  { %v601_v36 = vrot.slane %v588_v5, %v600_v35  ;;  %v649_v5 = vld [vmem:[%s3786_s7 + $0x130] sm:$0xff] }
 0x15b   :  { %1850 = vmatpush1.bf16.msra.mxu1 %v1849_v40  ;;  %v613_v40 = vld [vmem:[%s3786_s7 + $0x10] sm:$0xff] }
 0x15c   :  { %1852 = vmatprep.subr.bf16.mxu1 %v1851_v41  ;;  %v617_v41 = vld [vmem:[%s3786_s7 + $0x30] sm:$0xff] }
 0x15f   :  { %1854 = vmatpush1.bf16.msra.mxu1 %v1853_v47  ;;  %v1871_v47 = vpack.c.bf16 %v626_v44, %v622_v43  ;;  %v694_v43 = vld [vmem:[%s3786_s7 + $0x298] sm:$0xff] }
 0x160   :  { %1856 = vmatprep.subr.bf16.mxu1 %v1855_v48  ;;  %v621_v48 = vld [vmem:[%s3786_s7 + $0x50] sm:$0xff]  ;;  %v698_v44 = vld [vmem:[%s3786_s7 + $0x2b8] sm:$0xff] }
 0x161   :  { %v1873_v53 = vpack.c.bf16 %v625_v42, %v621_v48  ;;  %v693_v48 = vld [vmem:[%s3786_s7 + $0x290] sm:$0xff] }
 0x162   :  { %v697_v42 = vld [vmem:[%s3786_s7 + $0x2b0] sm:$0xff] }
 0x163   :  { %1858 = vmatpush1.bf16.msra.mxu1 %v1857_v54  ;;  %v1875_v54 = vpack.c.bf16 %v634_v52, %v630_v51  ;;  %v702_v51 = vld [vmem:[%s3786_s7 + $0x2d8] sm:$0xff] }
 0x164   :  { %1860 = vmatprep.subr.bf16.mxu1 %v1859_v55  ;;  %v629_v55 = vld [vmem:[%s3786_s7 + $0x90] sm:$0xff]  ;;  %v706_v52 = vld [vmem:[%s3786_s7 + $0x2f8] sm:$0xff] }
 0x165   :  { %v1877_v59 = vpack.c.bf16 %v633_v56, %v629_v55  ;;  %v1126_v55 = vld [vmem:[%s3789_s9 + $0x68] sm:$0xff]  ;;  %v1128_v56 = vld [vmem:[%s3789_s9 + $0x78] sm:$0xff] }
 0x167   :  { %1862 = vmatpush1.bf16.msra.mxu1 %v1861_v58  ;;  %v642_v58 = vld [vmem:[%s3786_s7 + $0xf8] sm:$0xff] }
 0x168   :  { %1864 = vmatprep.subr.bf16.mxu1 %v1863_v61  ;;  %v1879_v60 = vpack.c.bf16 %v642_v58, %v638_v57  ;;  %v637_v61 = vld [vmem:[%s3786_s7 + $0xd0] sm:$0xff]  ;;  %v1909_v57 = vpack.c.bf16 %v697_v42, %v693_v48  ;;  %v710_v58 = vld [vmem:[%s3786_s7 + $0x318] sm:$0xff]  ;;  %v1146_v42 = vld [vmem:[%s3789_s9 + $0x108] sm:$0xff] }
 0x169   :  { %v1881_v1 = vpack.c.bf16 %v641_v62, %v637_v61  ;;  %v1127_v61 = vld [vmem:[%s3789_s9 + $0x70] sm:$0xff]  ;;  %v1130_v62 = vld [vmem:[%s3789_s9 + $0x88] sm:$0xff] }
 0x16a   :  { %v729_v48 = vld [vmem:[%s3786_s7 + $0x3b0] sm:$0xff] }
 0x16b   :  { %1866 = vmatpush1.bf16.msra.mxu1 %v1865_v0  ;;  %v650_v0 = vld [vmem:[%s3786_s7 + $0x138] sm:$0xff] }
 0x16c   :  { %1868 = vmatprep.subr.bf16.mxu1 %v1867_v4  ;;  %v1883_v2 = vpack.c.bf16 %v650_v0, %v646_v63  ;;  %v645_v4 = vld [vmem:[%s3786_s7 + $0x110] sm:$0xff]  ;;  %v1911_v63 = vpack.c.bf16 %v706_v52, %v702_v51  ;;  %v1148_v51 = vld [vmem:[%s3789_s9 + $0x118] sm:$0xff] }
 0x16d   :  { %v734_v52 = vld [vmem:[%s3786_s7 + $0x3d8] sm:$0xff] }
 0x1f1   :  { %v513_v8 = vpop.f32.mrb[0].mxu1 }
 0x1f2   :  { %v2989_v9 = vadd.f32 %v593_v6, %v513_v8  ;;  %v515_v10 = vpop.f32.mrb[1].mxu1  ;;  %v654_v6 = vld [vmem:[%s3786_s7 + $0x158] sm:$0xff]  ;;  %v1885_v8 = vpack.c.bf16 %v649_v5, %v645_v4  ;;  %v1131_v4 = vld [vmem:[%s3789_s9 + $0x90] sm:$0xff] }
 0x1f3   :  { %v606_v11 = vadd.f32 %v597_v7, %v515_v10  ;;  %v658_v7 = vld [vmem:[%s3786_s7 + $0x178] sm:$0xff] }
 0x1f4   :  { %v608_v13 = vmax.f32 %v2989_v9, 0.0  ;;  %v1887_v10 = vpack.c.bf16 %v658_v7, %v654_v6  ;;  %v714_v5 = vld [vmem:[%s3786_s7 + $0x338] sm:$0xff]  ;;  %v1134_v7 = vld [vmem:[%s3789_s9 + $0xa8] sm:$0xff]  ;;  %v1159_v9 = vld [vmem:[%s3789_s9 + $0x170] sm:$0xff] }
 0x1f5   :  { %v609_v12 = vmax.f32 %v606_v11, 0.0  ;;  %v653_v11 = vld [vmem:[%s3786_s7 + $0x150] sm:$0xff] }
 0x1f7   :  { %889 = vmatprep.mubr.f32.mxu0 %v609_v12 }
 0x1f8   :  { %890 = vmatmul.mubr.f32.vlgmr.msra.gmra.mrb[2].mxu0 %v608_v13 }
 0x1f9   :  { %1966 = vmatpush1.bf16.msra.mxu0 %v1965_v24  ;;  %v674_v24 = vld [vmem:[%s3786_s7 + $0x1f8] sm:$0xff] }
 0x1fa   :  { %1968 = vmatprep.subr.bf16.mxu0 %v1967_v25  ;;  %v1893_v25 = vpack.c.bf16 %v665_v22, %v661_v21  ;;  %v1895_v26 = vpack.c.bf16 %v674_v24, %v670_v23  ;;  %v713_v21 = vld [vmem:[%s3786_s7 + $0x330] sm:$0xff]  ;;  %v1138_v22 = vld [vmem:[%s3789_s9 + $0xc8] sm:$0xff]  ;;  %v1140_v23 = vld [vmem:[%s3789_s9 + $0xd8] sm:$0xff] }
 0x1fb   :  { %v718_v24 = vld [vmem:[%s3786_s7 + $0x358] sm:$0xff] }
 0x1fd   :  { %1970 = vmatpush1.bf16.msra.mxu0 %v1969_v30  ;;  %v682_v30 = vld [vmem:[%s3786_s7 + $0x238] sm:$0xff] }
 0x1fe   :  { %1972 = vmatprep.subr.bf16.mxu0 %v1971_v31  ;;  %v1897_v31 = vpack.c.bf16 %v673_v28, %v669_v27  ;;  %v1899_v32 = vpack.c.bf16 %v682_v30, %v678_v29  ;;  %v717_v28 = vld [vmem:[%s3786_s7 + $0x350] sm:$0xff]  ;;  %v1987_v29 = vpack.c.bf16 %v1140_v23, %v1138_v22  ;;  %v1137_v30 = vld [vmem:[%s3789_s9 + $0xc0] sm:$0xff] }
 0x1ff   :  { %v749_v22 = vld [vmem:[%s3786_s7 + $0x450] sm:$0xff]  ;;  %v1153_v23 = vld [vmem:[%s3789_s9 + $0x140] sm:$0xff] }
 0x201   :  { %1974 = vmatpush1.bf16.msra.mxu0 %v1973_v34  ;;  %v681_v34 = vld [vmem:[%s3786_s7 + $0x230] sm:$0xff] }
 0x221   :  { %v584_v37 = vpop.f32.mrb[4].mxu1 }
 0x222   :  { %v585_v38 = vadd.f32 %v584_v37, %v2714_v49  ;;  %v586_v39 = vpop.f32.mrb[5].mxu1  ;;  %v1869_v49 = vpack.c.bf16 %v617_v41, %v613_v40  ;;  %v690_v37 = vld [vmem:[%s3786_s7 + $0x278] sm:$0xff]  ;;  %v685_v40 = vld [vmem:[%s3786_s7 + $0x250] sm:$0xff] }
 0x223   :  { %v689_v41 = vld [vmem:[%s3786_s7 + $0x270] sm:$0xff] }
 0x224   :  { %v3046_v45 = vadd.f32 %v601_v36, %v585_v38  ;;  %v686_v36 = vld [vmem:[%s3786_s7 + $0x258] sm:$0xff]  ;;  %v1901_v38 = vpack.c.bf16 %v681_v34, %v677_v33  ;;  %v721_v33 = vld [vmem:[%s3786_s7 + $0x370] sm:$0xff]  ;;  %v1142_v34 = vld [vmem:[%s3789_s9 + $0xe8] sm:$0xff] }
 0x225   :  { %v1903_v39 = vpack.c.bf16 %v690_v37, %v686_v36  ;;  %v1144_v36 = vld [vmem:[%s3789_s9 + $0xf8] sm:$0xff] }
 0x226   :  { %v610_v46 = vmax.f32 %v3046_v45, 0.0  ;;  %v726_v37 = vld [vmem:[%s3786_s7 + $0x398] sm:$0xff] }
 0x227   :  { %v1400_v45 = vld [vmem:[%s3790_s11 + $0x18] sm:$0xff] }
 0x228   :  { %961 = vmatmul.mubr.f32.vlgmr.msra.gmra.mrb[6].mxu1 %v610_v46 }
 0x229   :  { %1870 = vmatpush1.bf16.msra.mxu1 %v1869_v49  ;;  %1031 = vmatprep.mubr.f32.mxu1 %v609_v12  ;;  %v657_v12 = vld [vmem:[%s3786_s7 + $0x170] sm:$0xff]  ;;  %v1905_v49 = vpack.c.bf16 %v689_v41, %v685_v40  ;;  %v1921_v40 = vpack.c.bf16 %v721_v33, %v717_v28  ;;  %v1158_v28 = vld [vmem:[%s3789_s9 + $0x168] sm:$0xff] }
 0x22a   :  { %1872 = vmatprep.subr.bf16.mxu1 %v1871_v47  ;;  %v1889_v18 = vpack.c.bf16 %v657_v12, %v653_v11  ;;  %v1907_v47 = vpack.c.bf16 %v698_v44, %v694_v43  ;;  %v709_v12 = vld [vmem:[%s3786_s7 + $0x310] sm:$0xff]  ;;  %v1991_v43 = vpack.c.bf16 %v1144_v36, %v1142_v34  ;;  %v1141_v44 = vld [vmem:[%s3789_s9 + $0xe0] sm:$0xff] }
 0x22b   :  { %v1917_v27 = vpack.c.bf16 %v713_v21, %v709_v12  ;;  %v725_v41 = vld [vmem:[%s3786_s7 + $0x390] sm:$0xff]  ;;  %v750_v12 = vld [vmem:[%s3786_s7 + $0x458] sm:$0xff] }
 0x22c   :  { %v757_v34 = vld [vmem:[%s3786_s7 + $0x490] sm:$0xff] }
 0x22d   :  { %1874 = vmatpush1.bf16.msra.mxu1 %v1873_v53  ;;  %v701_v53 = vld [vmem:[%s3786_s7 + $0x2d0] sm:$0xff] }
 0x22e   :  { %1876 = vmatprep.subr.bf16.mxu1 %v1875_v54  ;;  %v705_v54 = vld [vmem:[%s3786_s7 + $0x2f0] sm:$0xff] }
 0x22f   :  { %v1913_v11 = vpack.c.bf16 %v705_v54, %v701_v53  ;;  %v738_v53 = vld [vmem:[%s3786_s7 + $0x3f8] sm:$0xff] }
 0x231   :  { %1878 = vmatpush1.bf16.msra.mxu1 %v1877_v59  ;;  %v1975_v59 = vpack.c.bf16 %v1128_v56, %v1126_v55  ;;  %v1925_v55 = vpack.c.bf16 %v729_v48, %v725_v41  ;;  %v733_v56 = vld [vmem:[%s3786_s7 + $0x3d0] sm:$0xff]  ;;  %v766_v41 = vld [vmem:[%s3786_s7 + $0x4d8] sm:$0xff] }
 0x232   :  { %1880 = vmatprep.subr.bf16.mxu1 %v1879_v60  ;;  %v1125_v60 = vld [vmem:[%s3789_s9 + $0x60] sm:$0xff] }
 0x233   :  { %v1977_v0 = vpack.c.bf16 %v1127_v61, %v1125_v60  ;;  %1976 = vmatprep.subr.bf16.mxu0 %v1975_v59  ;;  %v1147_v59 = vld [vmem:[%s3789_s9 + $0x110] sm:$0xff]  ;;  %v1927_v60 = vpack.c.bf16 %v738_v53, %v734_v52 }
 0x234   :  { %v737_v61 = vld [vmem:[%s3786_s7 + $0x3f0] sm:$0xff] }
 0x235   :  { %1882 = vmatpush1.bf16.msra.mxu1 %v1881_v1  ;;  %v1132_v1 = vld [vmem:[%s3789_s9 + $0x98] sm:$0xff]  ;;  %1978 = vmatpush1.bf16.msra.mxu0 %v1977_v0  ;;  %v769_v53 = vld [vmem:[%s3786_s7 + $0x4f0] sm:$0xff] }
 0x236   :  { %1884 = vmatprep.subr.bf16.mxu1 %v1883_v2  ;;  %v1129_v2 = vld [vmem:[%s3789_s9 + $0x80] sm:$0xff]  ;;  %v1979_v6 = vpack.c.bf16 %v1132_v1, %v1130_v62  ;;  %v1150_v62 = vld [vmem:[%s3789_s9 + $0x128] sm:$0xff]  ;;  %v742_v0 = vld [vmem:[%s3786_s7 + $0x418] sm:$0xff] }
 0x237   :  { %v746_v1 = vld [vmem:[%s3786_s7 + $0x438] sm:$0xff] }
 0x238   :  { %1980 = vmatprep.subr.bf16.mxu0 %v1979_v6  ;;  %v1149_v6 = vld [vmem:[%s3789_s9 + $0x120] sm:$0xff] }
 0x239   :  { %1886 = vmatpush1.bf16.msra.mxu1 %v1885_v8  ;;  %v1136_v8 = vld [vmem:[%s3789_s9 + $0xb8] sm:$0xff] }
 0x23a   :  { %1888 = vmatprep.subr.bf16.mxu1 %v1887_v10  ;;  %v1981_v10 = vpack.c.bf16 %v1131_v4, %v1129_v2  ;;  %v1983_v14 = vpack.c.bf16 %v1136_v8, %v1134_v7  ;;  %v1929_v4 = vpack.c.bf16 %v737_v61, %v733_v56  ;;  %v1151_v7 = vld [vmem:[%s3789_s9 + $0x130] sm:$0xff]  ;;  %v1931_v8 = vpack.c.bf16 %v746_v1, %v742_v0  ;;  %v774_v56 = vld [vmem:[%s3786_s7 + $0x518] sm:$0xff] }
 0x23b   :  { %v777_v1 = vld [vmem:[%s3786_s7 + $0x530] sm:$0xff] }
 0x23c   :  { %1982 = vmatpush1.bf16.msra.mxu0 %v1981_v10  ;;  %v741_v10 = vld [vmem:[%s3786_s7 + $0x410] sm:$0xff] }
 0x23d   :  { %1890 = vmatpush1.bf16.msra.mxu1 %v1889_v18  ;;  %v1135_v18 = vld [vmem:[%s3789_s9 + $0xb0] sm:$0xff]  ;;  %1984 = vmatprep.subr.bf16.mxu0 %v1983_v14  ;;  %v754_v14 = vld [vmem:[%s3786_s7 + $0x478] sm:$0xff] }
 0x23e   :  { %1892 = vmatprep.subr.bf16.mxu1 %v1891_v20  ;;  %v1915_v20 = vpack.c.bf16 %v714_v5, %v710_v58  ;;  %v1145_v58 = vld [vmem:[%s3789_s9 + $0x100] sm:$0xff] }
 0x23f   :  { %v1997_v2 = vpack.c.bf16 %v1147_v59, %v1145_v58 }
 0x241   :  { %1894 = vmatpush1.bf16.msra.mxu1 %v1893_v25  ;;  %v722_v25 = vld [vmem:[%s3786_s7 + $0x378] sm:$0xff] }
 0x242   :  { %1896 = vmatprep.subr.bf16.mxu1 %v1895_v26  ;;  %v1985_v26 = vpack.c.bf16 %v1135_v18, %v1133_v15  ;;  %v1154_v15 = vld [vmem:[%s3789_s9 + $0x148] sm:$0xff]  ;;  %v1156_v18 = vld [vmem:[%s3789_s9 + $0x158] sm:$0xff] }
 0x244   :  { %1986 = vmatpush1.bf16.msra.mxu0 %v1985_v26  ;;  %v753_v26 = vld [vmem:[%s3786_s7 + $0x470] sm:$0xff] }
 0x245   :  { %1898 = vmatpush1.bf16.msra.mxu1 %v1897_v31  ;;  %v1139_v31 = vld [vmem:[%s3789_s9 + $0xd0] sm:$0xff]  ;;  %1988 = vmatprep.subr.bf16.mxu0 %v1987_v29  ;;  %v1160_v29 = vld [vmem:[%s3789_s9 + $0x178] sm:$0xff]  ;;  %v1937_v33 = vpack.c.bf16 %v753_v26, %v749_v22 }
 0x246   :  { %1900 = vmatprep.subr.bf16.mxu1 %v1899_v32  ;;  %v1919_v32 = vpack.c.bf16 %v722_v25, %v718_v24  ;;  %v1155_v24 = vld [vmem:[%s3789_s9 + $0x150] sm:$0xff]  ;;  %v1935_v25 = vpack.c.bf16 %v754_v14, %v750_v12  ;;  %v2007_v36 = vpack.c.bf16 %v1160_v29, %v1158_v28  ;;  %v802_v28 = vld [vmem:[%s3786_s7 + $0x5f8] sm:$0xff]  ;;  %v1174_v29 = vld [vmem:[%s3789_s9 + $0x1e8] sm:$0xff] }
 0x247   :  { %v781_v12 = vld [vmem:[%s3786_s7 + $0x550] sm:$0xff] }
 0x248   :  { %v785_v14 = vld [vmem:[%s3786_s7 + $0x570] sm:$0xff] }
 0x249   :  { %1902 = vmatpush1.bf16.msra.mxu1 %v1901_v38  ;;  %v730_v38 = vld [vmem:[%s3786_s7 + $0x3b8] sm:$0xff]  ;;  %v1171_v22 = vld [vmem:[%s3789_s9 + $0x1d0] sm:$0xff] }
 0x24a   :  { %1904 = vmatprep.subr.bf16.mxu1 %v1903_v39  ;;  %v1989_v39 = vpack.c.bf16 %v1139_v31, %v1137_v30  ;;  %v758_v30 = vld [vmem:[%s3786_s7 + $0x498] sm:$0xff] }
 0x24b   :  { %v762_v31 = vld [vmem:[%s3786_s7 + $0x4b8] sm:$0xff] }
 0x24c   :  { %1990 = vmatpush1.bf16.msra.mxu0 %v1989_v39  ;;  %v1162_v39 = vld [vmem:[%s3789_s9 + $0x188] sm:$0xff] }
 0x24d   :  { %1906 = vmatpush1.bf16.msra.mxu1 %v1905_v49  ;;  %v1143_v49 = vld [vmem:[%s3789_s9 + $0xf0] sm:$0xff]  ;;  %1992 = vmatprep.subr.bf16.mxu0 %v1991_v43  ;;  %v770_v43 = vld [vmem:[%s3786_s7 + $0x4f8] sm:$0xff] }
 0x24e   :  { %1908 = vmatprep.subr.bf16.mxu1 %v1907_v47  ;;  %v1923_v47 = vpack.c.bf16 %v730_v38, %v726_v37  ;;  %v1993_v54 = vpack.c.bf16 %v1143_v49, %v1141_v44  ;;  %v1157_v37 = vld [vmem:[%s3789_s9 + $0x160] sm:$0xff]  ;;  %v761_v38 = vld [vmem:[%s3786_s7 + $0x4b0] sm:$0xff]  ;;  %v1943_v52 = vpack.c.bf16 %v770_v43, %v766_v41 }
 0x24f   :  { %v2009_v44 = vpack.c.bf16 %v1159_v9, %v1157_v37  ;;  %v1941_v49 = vpack.c.bf16 %v761_v38, %v757_v34  ;;  %v1175_v34 = vld [vmem:[%s3789_s9 + $0x1f0] sm:$0xff] }
 0x250   :  { %1994 = vmatpush1.bf16.msra.mxu0 %v1993_v54  ;;  %v1166_v54 = vld [vmem:[%s3789_s9 + $0x1a8] sm:$0xff]  ;;  %v797_v37 = vld [vmem:[%s3786_s7 + $0x5d0] sm:$0xff] }
 0x251   :  { %1910 = vmatpush1.bf16.msra.mxu1 %v1909_v57  ;;  %v1995_v57 = vpack.c.bf16 %v1148_v51, %v1146_v42  ;;  %v1161_v42 = vld [vmem:[%s3789_s9 + $0x180] sm:$0xff]  ;;  %v1163_v51 = vld [vmem:[%s3789_s9 + $0x190] sm:$0xff] }
 0x252   :  { %1912 = vmatprep.subr.bf16.mxu1 %v1911_v63  ;;  %v1152_v63 = vld [vmem:[%s3789_s9 + $0x138] sm:$0xff]  ;;  %v2013_v58 = vpack.c.bf16 %v1163_v51, %v1161_v42  ;;  %v801_v9 = vld [vmem:[%s3786_s7 + $0x5f0] sm:$0xff]  ;;  %v1401_v51 = vld [vmem:[%s3790_s11 + $0x20] sm:$0xff] }
 0x253   :  { %1996 = vmatprep.subr.bf16.mxu0 %v1995_v57  ;;  %v1999_v5 = vpack.c.bf16 %v1152_v63, %v1150_v62  ;;  %v778_v57 = vld [vmem:[%s3786_s7 + $0x538] sm:$0xff]  ;;  %v1165_v62 = vld [vmem:[%s3789_s9 + $0x1a0] sm:$0xff]  ;;  %v1167_v63 = vld [vmem:[%s3789_s9 + $0x1b0] sm:$0xff]  ;;  %v1961_v38 = vpack.c.bf16 %v801_v9, %v797_v37 }
 0x254   :  { %1998 = vmatpush1.bf16.msra.mxu0 %v1997_v2  ;;  %v1947_v0 = vpack.c.bf16 %v778_v57, %v774_v56  ;;  %v1170_v2 = vld [vmem:[%s3789_s9 + $0x1c8] sm:$0xff]  ;;  %v1405_v57 = vld [vmem:[%s3790_s11 + $0x40] sm:$0xff] }
 0x255   :  { %1914 = vmatpush1.bf16.msra.mxu1 %v1913_v11  ;;  %v745_v11 = vld [vmem:[%s3786_s7 + $0x430] sm:$0xff]  ;;  %2000 = vmatprep.subr.bf16.mxu0 %v1999_v5  ;;  %v782_v5 = vld [vmem:[%s3786_s7 + $0x558] sm:$0xff]  ;;  %v1189_v9 = vld [vmem:[%s3789_s9 + $0x260] sm:$0xff] }
 0x256   :  { %1916 = vmatprep.subr.bf16.mxu1 %v1915_v20  ;;  %v2001_v20 = vpack.c.bf16 %v1151_v7, %v1149_v6  ;;  %v1933_v21 = vpack.c.bf16 %v745_v11, %v741_v10  ;;  %v786_v6 = vld [vmem:[%s3786_s7 + $0x578] sm:$0xff]  ;;  %v2017_v7 = vpack.c.bf16 %v1167_v63, %v1165_v62 }
 0x257   :  { %v1951_v11 = vpack.c.bf16 %v786_v6, %v782_v5  ;;  %v1408_v62 = vld [vmem:[%s3790_s11 + $0x58] sm:$0xff] }
 0x258   :  { %2002 = vmatpush1.bf16.msra.mxu0 %v2001_v20  ;;  %v1953_v20 = vpack.c.bf16 %v785_v14, %v781_v12  ;;  %v1177_v12 = vld [vmem:[%s3789_s9 + $0x200] sm:$0xff]  ;;  %v1179_v14 = vld [vmem:[%s3789_s9 + $0x210] sm:$0xff] }
 0x259   :  { %1918 = vmatpush1.bf16.msra.mxu1 %v1917_v27  ;;  %v2003_v27 = vpack.c.bf16 %v1156_v18, %v1154_v15  ;;  %v790_v15 = vld [vmem:[%s3786_s7 + $0x598] sm:$0xff] }
 0x25a   :  { %1920 = vmatprep.subr.bf16.mxu1 %v1919_v32  ;;  %v2005_v32 = vpack.c.bf16 %v1155_v24, %v1153_v23  ;;  %v794_v18 = vld [vmem:[%s3786_s7 + $0x5b8] sm:$0xff]  ;;  %v789_v24 = vld [vmem:[%s3786_s7 + $0x590] sm:$0xff] }
 0x25b   :  { %2004 = vmatprep.subr.bf16.mxu0 %v2003_v27  ;;  %v1955_v23 = vpack.c.bf16 %v794_v18, %v790_v15  ;;  %v798_v27 = vld [vmem:[%s3786_s7 + $0x5d8] sm:$0xff]  ;;  %v1182_v18 = vld [vmem:[%s3789_s9 + $0x228] sm:$0xff] }
 0x25c   :  { %2006 = vmatpush1.bf16.msra.mxu0 %v2005_v32 }
 0x25d   :  { %1922 = vmatpush1.bf16.msra.mxu1 %v1921_v40  ;;  %v1164_v40 = vld [vmem:[%s3789_s9 + $0x198] sm:$0xff]  ;;  %2008 = vmatprep.subr.bf16.mxu0 %v2007_v36  ;;  %v1959_v36 = vpack.c.bf16 %v802_v28, %v798_v27  ;;  %v1186_v27 = vld [vmem:[%s3789_s9 + $0x248] sm:$0xff] }
 0x25e   :  { %1924 = vmatprep.subr.bf16.mxu1 %v1923_v47  ;;  %v765_v47 = vld [vmem:[%s3786_s7 + $0x4d0] sm:$0xff]  ;;  %v2011_v48 = vpack.c.bf16 %v1164_v40, %v1162_v39  ;;  %v1178_v39 = vld [vmem:[%s3789_s9 + $0x208] sm:$0xff]  ;;  %v1180_v40 = vld [vmem:[%s3789_s9 + $0x218] sm:$0xff] }
 0x25f   :  { %v1945_v59 = vpack.c.bf16 %v769_v53, %v765_v47  ;;  %v2027_v41 = vpack.c.bf16 %v1180_v40, %v1178_v39  ;;  %v1398_v47 = vld [vmem:[%s3790_s11 + $0x8] sm:$0xff]  ;;  %v1188_v28 = vld [vmem:[%s3789_s9 + $0x258] sm:$0xff] }
 0x260   :  { %2010 = vmatpush1.bf16.msra.mxu0 %v2009_v44  ;;  %v1196_v39 = vld [vmem:[%s3789_s9 + $0x298] sm:$0xff] }
 0x261   :  { %1926 = vmatpush1.bf16.msra.mxu1 %v1925_v55  ;;  %v1168_v55 = vld [vmem:[%s3789_s9 + $0x1b8] sm:$0xff]  ;;  %2012 = vmatprep.subr.bf16.mxu0 %v2011_v48  ;;  %v1399_v48 = vld [vmem:[%s3790_s11 + $0x10] sm:$0xff] }
 0x262   :  { %1928 = vmatprep.subr.bf16.mxu1 %v1927_v60  ;;  %v773_v60 = vld [vmem:[%s3786_s7 + $0x510] sm:$0xff]  ;;  %v2015_v61 = vpack.c.bf16 %v1168_v55, %v1166_v54  ;;  %v1404_v55 = vld [vmem:[%s3790_s11 + $0x38] sm:$0xff] }
 0x263   :  { %v1403_v54 = vld [vmem:[%s3790_s11 + $0x30] sm:$0xff] }
 0x264   :  { %2014 = vmatpush1.bf16.msra.mxu0 %v2013_v58  ;;  %v2101_v56 = vpack.c.bf16 %v1404_v55, %v1403_v54  ;;  %v1406_v58 = vld [vmem:[%s3790_s11 + $0x48] sm:$0xff]  ;;  %v1201_v55 = vld [vmem:[%s3789_s9 + $0x2c0] sm:$0xff] }
 0x265   :  { %1930 = vmatpush1.bf16.msra.mxu1 %v1929_v4  ;;  %v1172_v4 = vld [vmem:[%s3789_s9 + $0x1d8] sm:$0xff]  ;;  %2016 = vmatprep.subr.bf16.mxu0 %v2015_v61  ;;  %v1407_v61 = vld [vmem:[%s3790_s11 + $0x50] sm:$0xff] }
 0x266   :  { %1932 = vmatprep.subr.bf16.mxu1 %v1931_v8  ;;  %v1949_v8 = vpack.c.bf16 %v777_v1, %v773_v60  ;;  %v2019_v10 = vpack.c.bf16 %v1172_v4, %v1170_v2  ;;  %v3525_v60 = vld [vmem:[%s3791_s8] sm:$0xf]  ;;  %v1410_v4 = vld [vmem:[%s3790_s11 + $0x68] sm:$0xff] }
 0x267   :  { %v808_v63 = vrot.slane %v3525_v60, %v2767_v17  ;;  %v812_v1 = vrot.slane %v3525_v60, %v2773_v19  ;;  %v1409_v2 = vld [vmem:[%s3790_s11 + $0x60] sm:$0xff] }
 0x268   :  { %1032 = vmatmul.mubr.f32.vlgmr.msra.gmra.mrb[8].mxu1 %v608_v13  ;;  %v1939_v13 = vpack.c.bf16 %v762_v31, %v758_v30  ;;  %2018 = vmatpush1.bf16.msra.mxu0 %v2017_v7  ;;  %v1176_v30 = vld [vmem:[%s3789_s9 + $0x1f8] sm:$0xff]  ;;  %v2110_v6 = vpack.c.bf16 %v1410_v4, %v1409_v2 }
 0x269   :  { %1934 = vmatpush1.bf16.msra.mxu1 %v1933_v21  ;;  %1102 = vmatprep.mubr.f32.mxu1 %v2142_v3  ;;  %v1169_v21 = vld [vmem:[%s3789_s9 + $0x1c0] sm:$0xff]  ;;  %v2023_v32 = vpack.c.bf16 %v1176_v30, %v1174_v29  ;;  %v2035_v30 = vpack.c.bf16 %v1188_v28, %v1186_v27 }
 0x26a   :  { %1936 = vmatprep.subr.bf16.mxu1 %v1935_v25  ;;  %2020 = vmatprep.subr.bf16.mxu0 %v2019_v10  ;;  %v793_v25 = vld [vmem:[%s3786_s7 + $0x5b0] sm:$0xff]  ;;  %v2021_v26 = vpack.c.bf16 %v1171_v22, %v1169_v21  ;;  %v2029_v22 = vpack.c.bf16 %v1179_v14, %v1177_v12  ;;  %v1213_v12 = vld [vmem:[%s3789_s9 + $0x320] sm:$0xff] }
 0x26b   :  { %v1957_v31 = vpack.c.bf16 %v793_v25, %v789_v24  ;;  %v1181_v25 = vld [vmem:[%s3789_s9 + $0x220] sm:$0xff]  ;;  %v1215_v14 = vld [vmem:[%s3789_s9 + $0x330] sm:$0xff] }
 0x26c   :  { %2022 = vmatpush1.bf16.msra.mxu0 %v2021_v26  ;;  %v1183_v26 = vld [vmem:[%s3789_s9 + $0x230] sm:$0xff]  ;;  %v1221_v28 = vld [vmem:[%s3789_s9 + $0x360] sm:$0xff] }
 0x26d   :  { %1938 = vmatpush1.bf16.msra.mxu1 %v1937_v33  ;;  %v1173_v33 = vld [vmem:[%s3789_s9 + $0x1e0] sm:$0xff]  ;;  %2024 = vmatprep.subr.bf16.mxu0 %v2023_v32  ;;  %v2033_v29 = vpack.c.bf16 %v1183_v26, %v1181_v25  ;;  %v1187_v32 = vld [vmem:[%s3789_s9 + $0x250] sm:$0xff]  ;;  %v1224_v25 = vld [vmem:[%s3789_s9 + $0x378] sm:$0xff] }
 0x26e   :  { %1940 = vmatprep.subr.bf16.mxu1 %v1939_v13  ;;  %v2025_v13 = vpack.c.bf16 %v1175_v34, %v1173_v33  ;;  %v1190_v33 = vld [vmem:[%s3789_s9 + $0x268] sm:$0xff]  ;;  %v1192_v34 = vld [vmem:[%s3789_s9 + $0x278] sm:$0xff] }
 0x26f   :  { %v2039_v37 = vpack.c.bf16 %v1192_v34, %v1190_v33  ;;  %v1225_v34 = vld [vmem:[%s3789_s9 + $0x380] sm:$0xff] }
 0x270   :  { %2026 = vmatpush1.bf16.msra.mxu0 %v2025_v13  ;;  %v1191_v13 = vld [vmem:[%s3789_s9 + $0x270] sm:$0xff] }
 0x271   :  { %1942 = vmatpush1.bf16.msra.mxu1 %v1941_v49  ;;  %2028 = vmatprep.subr.bf16.mxu0 %v2027_v41  ;;  %v1397_v49 = vld [vmem:[%s3790_s11] sm:$0xff]  ;;  %v2041_v40 = vpack.c.bf16 %v1191_v13, %v1189_v9  ;;  %v1232_v9 = vld [vmem:[%s3789_s9 + $0x3b8] sm:$0xff] }
 0x272   :  { %1944 = vmatprep.subr.bf16.mxu1 %v1943_v52  ;;  %v2092_v42 = vpack.c.bf16 %v1398_v47, %v1397_v49  ;;  %v1402_v52 = vld [vmem:[%s3790_s11 + $0x28] sm:$0xff]  ;;  %v1200_v47 = vld [vmem:[%s3789_s9 + $0x2b8] sm:$0xff] }
 0x273   :  { %v2098_v53 = vpack.c.bf16 %v1402_v52, %v1401_v51  ;;  %v1198_v49 = vld [vmem:[%s3789_s9 + $0x2a8] sm:$0xff]  ;;  %v1204_v52 = vld [vmem:[%s3789_s9 + $0x2d8] sm:$0xff] }
 0x274   :  { %v1202_v51 = vld [vmem:[%s3789_s9 + $0x2c8] sm:$0xff] }
 0x275   :  { %1946 = vmatpush1.bf16.msra.mxu1 %v1945_v59  ;;  %v2104_v59 = vpack.c.bf16 %v1406_v58, %v1405_v57  ;;  %v2051_v54 = vpack.c.bf16 %v1204_v52, %v1202_v51  ;;  %v1206_v57 = vld [vmem:[%s3789_s9 + $0x2e8] sm:$0xff]  ;;  %v1208_v58 = vld [vmem:[%s3789_s9 + $0x2f8] sm:$0xff]  ;;  %v1237_v52 = vld [vmem:[%s3789_s9 + $0x3e0] sm:$0xff] }
 0x276   :  { %1948 = vmatprep.subr.bf16.mxu1 %v1947_v0  ;;  %v2107_v0 = vpack.c.bf16 %v1408_v62, %v1407_v61  ;;  %v2055_v61 = vpack.c.bf16 %v1208_v58, %v1206_v57  ;;  %v1205_v62 = vld [vmem:[%s3789_s9 + $0x2e0] sm:$0xff] }
 0x279   :  { %1950 = vmatpush1.bf16.msra.mxu1 %v1949_v8 }
 0x27a   :  { %1952 = vmatprep.subr.bf16.mxu1 %v1951_v11 }
 0x27d   :  { %1954 = vmatpush1.bf16.msra.mxu1 %v1953_v20  ;;  %v1184_v20 = vld [vmem:[%s3789_s9 + $0x238] sm:$0xff] }
 0x27e   :  { %1956 = vmatprep.subr.bf16.mxu1 %v1955_v23  ;;  %v2031_v24 = vpack.c.bf16 %v1184_v20, %v1182_v18  ;;  %v1220_v18 = vld [vmem:[%s3789_s9 + $0x358] sm:$0xff]  ;;  %v2065_v20 = vpack.c.bf16 %v1215_v14, %v1213_v12 }
 0x281   :  { %1958 = vmatpush1.bf16.msra.mxu1 %v1957_v31  ;;  %v1185_v31 = vld [vmem:[%s3789_s9 + $0x240] sm:$0xff] }
 0x282   :  { %1960 = vmatprep.subr.bf16.mxu1 %v1959_v36  ;;  %v2037_v36 = vpack.c.bf16 %v1187_v32, %v1185_v31  ;;  %v1228_v31 = vld [vmem:[%s3789_s9 + $0x398] sm:$0xff] }
 0x285   :  { %1962 = vmatpush1.bf16.msra.mxu1 %v1961_v38  ;;  %v1194_v38 = vld [vmem:[%s3789_s9 + $0x288] sm:$0xff] }
 0x286   :  { %2091 = vmatprep.subr.bf16.mxu1 %v2144_v50  ;;  %v2043_v41 = vpack.c.bf16 %v1196_v39, %v1194_v38  ;;  %v1229_v39 = vld [vmem:[%s3789_s9 + $0x3a0] sm:$0xff] }
 0x288   :  { %1103 = vmatmul.mubr.f32.vlgmr.msra.gmra.mrb[8].mxu1 %v610_v46  ;;  %v2095_v46 = vpack.c.bf16 %v1400_v45, %v1399_v48  ;;  %v1197_v45 = vld [vmem:[%s3789_s9 + $0x2a0] sm:$0xff] }
 0x289   :  { %2093 = vmatpush1.bf16.msra.mxu1 %v2092_v42  ;;  %v2047_v42 = vpack.c.bf16 %v1200_v47, %v1198_v49  ;;  %v1233_v47 = vld [vmem:[%s3789_s9 + $0x3c0] sm:$0xff] }
 0x28a   :  { %2094 = vmatprep.subr.bf16.mxu1 %v2144_v50 }
 0x28d   :  { %2096 = vmatpush1.bf16.msra.mxu1 %v2095_v46  ;;  %v1199_v46 = vld [vmem:[%s3789_s9 + $0x2b0] sm:$0xff] }
 0x28e   :  { %2097 = vmatprep.subr.bf16.mxu1 %v2144_v50 }
 0x291   :  { %2099 = vmatpush1.bf16.msra.mxu1 %v2098_v53  ;;  %v2049_v53 = vpack.c.bf16 %v1199_v46, %v1197_v45  ;;  %v1240_v45 = vld [vmem:[%s3789_s9 + $0x3f8] sm:$0xff] }
 0x292   :  { %2100 = vmatprep.subr.bf16.mxu1 %v2144_v50 }
 0x295   :  { %2102 = vmatpush1.bf16.msra.mxu1 %v2101_v56  ;;  %v1203_v56 = vld [vmem:[%s3789_s9 + $0x2d0] sm:$0xff] }
 0x296   :  { %2103 = vmatprep.subr.bf16.mxu1 %v2144_v50 }
 0x299   :  { %2105 = vmatpush1.bf16.msra.mxu1 %v2104_v59  ;;  %v2053_v59 = vpack.c.bf16 %v1203_v56, %v1201_v55  ;;  %v819_v55 = vsub.s32 3, %v2764_v16  ;;  %v816_v56 = vrot.slane %v3525_v60, %v600_v35  ;;  %v1412_v16 = vld [vmem:[%s3790_s11 + $0x78] sm:$0xff] }
 0x29a   :  { %2106 = vmatprep.subr.bf16.mxu1 %v2144_v50 }
 0x29b   :  { %v820_v57 = vrot.slane %v3525_v60, %v819_v55  ;;  %v1413_v60 = vld [vmem:[%s3790_s11 + $0x80] sm:$0xff] }
 0x29d   :  { %2108 = vmatpush1.bf16.msra.mxu1 %v2107_v0  ;;  %v1210_v0 = vld [vmem:[%s3789_s9 + $0x308] sm:$0xff] }
 0x29e   :  { %2109 = vmatprep.subr.bf16.mxu1 %v2144_v50 }
 0x2a1   :  { %2111 = vmatpush1.bf16.msra.mxu1 %v2110_v6  ;;  %v1211_v6 = vld [vmem:[%s3789_s9 + $0x310] sm:$0xff] }
 0x2a2   :  { %2112 = vmatprep.subr.bf16.mxu1 %v2144_v50 }
 0x2cb   :  { %v891_v43 = vpop.f32.mrb[2].mxu0 }
 0x2cc   :  { %v893_v44 = vpop.f32.mrb[3].mxu0  ;;  %v892_v5 = vadd.f32 %v891_v43, %v808_v63  ;;  %v1193_v43 = vld [vmem:[%s3789_s9 + $0x280] sm:$0xff]  ;;  %v1207_v63 = vld [vmem:[%s3789_s9 + $0x2f0] sm:$0xff] }
 0x2cd   :  { %v894_v7 = vadd.f32 %v893_v44, %v812_v1  ;;  %v1195_v44 = vld [vmem:[%s3789_s9 + $0x290] sm:$0xff]  ;;  %v1212_v1 = vld [vmem:[%s3789_s9 + $0x318] sm:$0xff]  ;;  %v2057_v2 = vpack.c.bf16 %v1207_v63, %v1205_v62 }
 0x2ce   :  { %v2045_v48 = vpack.c.bf16 %v1195_v44, %v1193_v43  ;;  %v2059_v4 = vpack.c.bf16 %v1212_v1, %v1210_v0  ;;  %v1236_v43 = vld [vmem:[%s3789_s9 + $0x3d8] sm:$0xff]  ;;  %v1411_v1 = vld [vmem:[%s3790_s11 + $0x70] sm:$0xff] }
 0x2cf   :  { %v2113_v35 = vpack.c.bf16 %v1412_v16, %v1411_v1 }
 0x2d1   :  { %2114 = vmatpush1.bf16.msra.mxu1 %v2113_v35 }
 0x2d2   :  { %2115 = vmatprep.subr.bf16.mxu1 %v2144_v50 }
 0x2fb   :  { %v962_v8 = vpop.f32.mrb[6].mxu1 }
 0x2fc   :  { %v963_v10 = vadd.f32 %v962_v8, %v892_v5  ;;  %v964_v11 = vpop.f32.mrb[7].mxu1  ;;  %v1209_v5 = vld [vmem:[%s3789_s9 + $0x300] sm:$0xff]  ;;  %v1216_v8 = vld [vmem:[%s3789_s9 + $0x338] sm:$0xff] }
 0x2fd   :  { %v965_v15 = vadd.f32 %v964_v11, %v894_v7  ;;  %v1214_v7 = vld [vmem:[%s3789_s9 + $0x328] sm:$0xff] }
 0x2fe   :  { %v1109_v23 = vmax.f32 %v963_v10, 0.0  ;;  %v2061_v10 = vpack.c.bf16 %v1211_v6, %v1209_v5  ;;  %v2063_v11 = vpack.c.bf16 %v1216_v8, %v1214_v7  ;;  %v1498_v5 = vld [vmem:[%s3792_s13 + $0x8] sm:$0xff]  ;;  %v1241_v7 = vld [vmem:[%s3793_s10] sm:$0x3] }
 0x2ff   :  { %v1110_v21 = vmax.f32 %v965_v15, 0.0  ;;  %v1218_v15 = vld [vmem:[%s3789_s9 + $0x348] sm:$0xff]  ;;  %v1246_v8 = vrot.slane %v1241_v7, %v2767_v17 }
 0x301   :  { %1317 = vmatprep.mubr.f32.mxu0 %v1110_v21  ;;  %v2067_v21 = vpack.c.bf16 %v1220_v18, %v1218_v15 }
 0x302   :  { %1318 = vmatmul.mubr.f32.vlgmr.msra.gmra.mrb[4].mxu0 %v1109_v23  ;;  %v1219_v23 = vld [vmem:[%s3789_s9 + $0x350] sm:$0xff] }
 0x303   :  { %2030 = vmatpush1.bf16.msra.mxu0 %v2029_v22  ;;  %v1217_v22 = vld [vmem:[%s3789_s9 + $0x340] sm:$0xff] }
 0x304   :  { %2032 = vmatprep.subr.bf16.mxu0 %v2031_v24  ;;  %v1222_v24 = vld [vmem:[%s3789_s9 + $0x368] sm:$0xff]  ;;  %v2069_v26 = vpack.c.bf16 %v1219_v23, %v1217_v22  ;;  %v1596_v22 = vld [vmem:[%s3795_s12] ss:$0 sm:$0xff] }
 0x305   :  { %v2071_v27 = vpack.c.bf16 %v1224_v25, %v1222_v24 }
 0x307   :  { %2034 = vmatpush1.bf16.msra.mxu0 %v2033_v29  ;;  %v1223_v29 = vld [vmem:[%s3789_s9 + $0x370] sm:$0xff] }
 0x308   :  { %2036 = vmatprep.subr.bf16.mxu0 %v2035_v30  ;;  %v1226_v30 = vld [vmem:[%s3789_s9 + $0x388] sm:$0xff]  ;;  %v2073_v32 = vpack.c.bf16 %v1223_v29, %v1221_v28 }
 0x309   :  { %v2075_v33 = vpack.c.bf16 %v1228_v31, %v1226_v30 }
 0x30b   :  { %2038 = vmatpush1.bf16.msra.mxu0 %v2037_v36  ;;  %v1227_v36 = vld [vmem:[%s3789_s9 + $0x390] sm:$0xff] }
 0x30c   :  { %2040 = vmatprep.subr.bf16.mxu0 %v2039_v37  ;;  %v1230_v37 = vld [vmem:[%s3789_s9 + $0x3a8] sm:$0xff]  ;;  %v2077_v13 = vpack.c.bf16 %v1227_v36, %v1225_v34 }
 0x30d   :  { %v2079_v38 = vpack.c.bf16 %v1232_v9, %v1230_v37 }
 0x30f   :  { %2042 = vmatpush1.bf16.msra.mxu0 %v2041_v40  ;;  %v1231_v40 = vld [vmem:[%s3789_s9 + $0x3b0] sm:$0xff] }
 0x310   :  { %2044 = vmatprep.subr.bf16.mxu0 %v2043_v41  ;;  %v1234_v41 = vld [vmem:[%s3789_s9 + $0x3c8] sm:$0xff]  ;;  %v2081_v44 = vpack.c.bf16 %v1231_v40, %v1229_v39 }
 0x311   :  { %v2083_v49 = vpack.c.bf16 %v1236_v43, %v1234_v41 }
 0x313   :  { %2046 = vmatpush1.bf16.msra.mxu0 %v2045_v48  ;;  %v1235_v48 = vld [vmem:[%s3789_s9 + $0x3d0] sm:$0xff] }
 0x314   :  { %2048 = vmatprep.subr.bf16.mxu0 %v2047_v42  ;;  %v1238_v42 = vld [vmem:[%s3789_s9 + $0x3e8] sm:$0xff]  ;;  %v2085_v46 = vpack.c.bf16 %v1235_v48, %v1233_v47 }
 0x315   :  { %v2087_v51 = vpack.c.bf16 %v1240_v45, %v1238_v42 }
 0x317   :  { %2050 = vmatpush1.bf16.msra.mxu0 %v2049_v53  ;;  %v1239_v53 = vld [vmem:[%s3789_s9 + $0x3f0] sm:$0xff] }
 0x318   :  { %2052 = vmatprep.subr.bf16.mxu0 %v2051_v54  ;;  %v2089_v54 = vpack.c.bf16 %v1239_v53, %v1237_v52 }
 0x31b   :  { %2054 = vmatpush1.bf16.msra.mxu0 %v2053_v59 }
 0x31c   :  { %2056 = vmatprep.subr.bf16.mxu0 %v2055_v61 }
 0x31f   :  { %2058 = vmatpush1.bf16.msra.mxu0 %v2057_v2 }
 0x320   :  { %2060 = vmatprep.subr.bf16.mxu0 %v2059_v4  ;;  %v1497_v4 = vld [vmem:[%s3792_s13] sm:$0xff] }
 0x321   :  { %v2119_v6 = vpack.c.bf16 %v1498_v5, %v1497_v4 }
 0x323   :  { %2062 = vmatpush1.bf16.msra.mxu0 %v2061_v10  ;;  %v1250_v10 = vrot.slane %v1241_v7, %v2773_v19  ;;  %v20_v19 = vstv %s3794_s14 }
 0x324   :  { %2064 = vmatprep.subr.bf16.mxu0 %v2063_v11  ;;  %21 = vst [vmem:[#allocation2] sm:$0x1] %v20_v19 }
 0x327   :  { %2066 = vmatpush1.bf16.msra.mxu0 %v2065_v20 }
 0x328   :  { %2068 = vmatprep.subr.bf16.mxu0 %v2067_v21  ;;  %v1500_v21 = vld [vmem:[%s3792_s13 + $0x18] sm:$0xff] }
 0x32b   :  { %2070 = vmatpush1.bf16.msra.mxu0 %v2069_v26 }
 0x32c   :  { %2072 = vmatprep.subr.bf16.mxu0 %v2071_v27  ;;  %v1598_v27 = vld [vmem:[#allocation2] ss:$0 sm:$0xff] }
 0x32f   :  { %2074 = vmatpush1.bf16.msra.mxu0 %v2073_v32 }
 0x330   :  { %2076 = vmatprep.subr.bf16.mxu0 %v2075_v33 }
 0x333   :  { %2078 = vmatpush1.bf16.msra.mxu0 %v2077_v13 }
 0x334   :  { %2080 = vmatprep.subr.bf16.mxu0 %v2079_v38 }
 0x337   :  { %2082 = vmatpush1.bf16.msra.mxu0 %v2081_v44 }
 0x338   :  { %2084 = vmatprep.subr.bf16.mxu0 %v2083_v49 }
 0x33b   :  { %2086 = vmatpush1.bf16.msra.mxu0 %v2085_v46 }
 0x33c   :  { %2088 = vmatprep.subr.bf16.mxu0 %v2087_v51 }
 0x33f   :  { %2090 = vmatpush1.bf16.msra.mxu0 %v2089_v54 }
 0x340   :  { %2118 = vmatprep.subr.bf16.mxu0 %v2144_v50 }
 0x35b   :  { %v1104_v58 = vpop.f32.mrb[8].mxu1 }
 0x35c   :  { %v2128_v59 = vadd.f32 %v1104_v58, %v816_v56  ;;  %v1106_v61 = vpop.f32.mrb[9].mxu1 }
 0x35d   :  { %v2129_v62 = vadd.f32 %v1106_v61, %v820_v57 }
 0x35e   :  { %v1111_v0 = vmax.f32 %v2128_v59, 0.0 }
 0x35f   :  { %v1112_v63 = vmax.f32 %v2129_v62, 0.0 }
 0x361   :  { %1388 = vmatprep.mubr.f32.mxu0 %v1112_v63 }
 0x362   :  { %1389 = vmatmul.mubr.f32.vlgmr.msra.gmra.mrb[4].mxu0 %v1111_v0 }
 0x363   :  { %1620 = vmatprep.mubr.msk.f32.mxu0 %vm2143_vm2, %v2142_v3  ;;  %v1414_v3 = vld [vmem:[%s3790_s11 + $0x88] sm:$0xff]  ;;  %2120 = vmatpush3.bf16.msra.mxu0 %v2119_v6 }
 0x364   :  { %v2116_v2 = vpack.c.bf16 %v1414_v3, %v1413_v60  ;;  %2121 = vmatprep.subr.bf16.mxu0 %v2144_v50  ;;  %v1499_v50 = vld [vmem:[%s3792_s13 + $0x10] sm:$0xff] }
 0x365   :  { %v2122_v17 = vpack.c.bf16 %v1500_v21, %v1499_v50 }
 0x366   :  { %2117 = vmatpush1.bf16.msra.mxu1 %v2116_v2 }
 0x367   :  { %2123 = vmatpush3.bf16.msra.mxu0 %v2122_v17 }
 0x435   :  { %v1390_v11 = vpop.f32.mrb[4].mxu0 }
 0x436   :  { %v2130_v12 = vadd.f32 %v1390_v11, %v1246_v8  ;;  %v1392_v14 = vpop.f32.mrb[5].mxu0 }
 0x437   :  { %v2131_v15 = vadd.f32 %v1392_v14, %v1250_v10 }
 0x438   :  { %v1395_v20 = vmax.f32 %v2130_v12, 0.0 }
 0x439   :  { %v1396_v18 = vmax.f32 %v2131_v15, 0.0 }
 0x43b   :  { %1597 = vmatprep.mubr.msk.f32.mxu1 %vm1422_vm4, %v1396_v18 }
 0x43c   :  { %1491 = vmatmul.mubr.f32.vlgmr.msra.gmra.mrb[10].mxu1 %v1395_v20 }
 0x50f   :  { %v1492_v23 = vpop.f32.mrb[10].mxu1 }
 0x510   :  { %v1493_v24 = vadd.f32 %v1596_v22, %v1492_v23  ;;  %v1494_v25 = vpop.f32.mrb[11].mxu1 }
 0x512   :  { %v1496_v26 = vmax.f32 %v1493_v24, 0.0 }
 0x514   :  { %1621 = vmatmul.mubr.msk.f32.vlgmr.msra.gmra.mrb[6].mxu0 %vm1508_vm5, %v1496_v26 }
 0x5e7   :  { %v1578_v28 = vpop.f32.mrb[6].mxu0 }
 0x5e8   :  { %v1579_v29 = vadd.f32 %v1598_v27, %v1578_v28  ;;  %v1622_v30 = vpop.f32.mrb[7].mxu0 }
 0x5ea   :  { %1583 = vst.msk [vmem:[%s3796_s15] sm:$0x3] %vm1582_vm6, %v1579_v29 }

</bundles_post_ra>
